<compile_context>
chip_gen: v6e
topology: v6e:2x2x1
jax: 0.10.0
libtpu: 0.0.40
codegen_flags: <defaults>
</compile_context>

<pallas_src>
import jax
import jax.numpy as jnp
from jax import lax
from jax.experimental import pallas as pl
from jax.experimental.pallas import tpu as pltpu


def make_decoder_layer_kernel(num_heads, head_dim, eps=1e-5):
    H, hd = num_heads, head_dim
    E = H * hd
    f32, bf16 = jnp.float32, jnp.bfloat16

    def to_heads(m2d):
        # (L, E) -> (H, L, hd); per-head columns are already grouped, so this is
        # H static lane slices stacked along a new leading (batch) axis.
        return jnp.stack([m2d[:, h * hd:(h + 1) * hd] for h in range(H)], axis=0)

    def from_heads(m3d):
        # (H, L, hd) -> (L, E) with head blocks in order (matches concat @ Wo).
        return jnp.concatenate([m3d[h] for h in range(H)], axis=-1)

    def kernel(x_ref, mem_ref,
               w_qkv1, b_qkv1, wo1, bo1,
               w_qkv2, b_qkv2, wo2, bo2,
               wf1, bf1_, wf2, bf2_,
               g1, be1, g2, be2, g3, be3,
               out_ref):
        x = x_ref[...].astype(f32)      # (T, E)
        mem = mem_ref[...].astype(f32)  # (S, E)
        T = x.shape[0]

        def mm(a, w):
            # bf16 MXU operands, f32 accumulation (weights already stored bf16)
            return jnp.dot(a.astype(bf16), w, preferred_element_type=f32)

        def layer_norm(a, g_ref, b_ref):
            mu = jnp.mean(a, axis=-1, keepdims=True)
            var = jnp.mean((a - mu) ** 2, axis=-1, keepdims=True)
            return (a - mu) * lax.rsqrt(var + eps) * g_ref[0] + b_ref[0]

        def attend(q2d, k2d, v2d, wo_ref, bo_ref, mask):
            # q2d/k2d/v2d: (Tq/Tk, E) f32; 1/sqrt(hd) already folded into the q weights.
            qh = to_heads(q2d).astype(bf16)          # (H, Tq, hd)
            kh = to_heads(k2d).astype(bf16)          # (H, Tk, hd)
            vh = to_heads(v2d).astype(bf16)          # (H, Tk, hd)
            # TODO(synk): at production sizes keep Tk a multiple of 128 (or flash-tile it)
            #             so the softmax exp/max/sum run lane-dense.
            logits = jnp.einsum('hqd,hkd->hqk', qh, kh,
                                preferred_element_type=f32)        # (H, Tq, Tk)
            if mask is not None:
                logits = jnp.where(mask[None], -1e30, logits)
            m = jnp.max(logits, axis=-1, keepdims=True)
            p = jnp.exp(logits - m)
            attn = p * pl.reciprocal(jnp.sum(p, axis=-1, keepdims=True), approx=True)
            ctx = jnp.einsum('hqk,hkd->hqd', attn.astype(bf16), vh,
                             preferred_element_type=f32)           # (H, Tq, hd)
            # single lane-dense output projection against the unsplit Wo
            return mm(from_heads(ctx), wo_ref[...]) + bo_ref[0]

        # causal mask built ONCE (hoisted out of any head loop)
        row = lax.broadcasted_iota(jnp.int32, (T, T), 0)
        col = lax.broadcasted_iota(jnp.int32, (T, T), 1)
        causal = col > row

        # ---- self-attention: one fused (T,E) @ (E,3E) projection ----
        qkv = mm(x, w_qkv1[...]) + b_qkv1[0]                       # (T, 3E)
        sa = attend(qkv[:, :E], qkv[:, E:2 * E], qkv[:, 2 * E:], wo1, bo1, causal)
        x1 = layer_norm(x + sa, g1, be1)

        # ---- encoder-decoder attention: q from x1, fused (S,E) @ (E,2E) for k/v ----
        w2 = w_qkv2[...]
        b2 = b_qkv2[0]
        q2 = mm(x1, w2[:, :E]) + b2[:E]                            # (T, E)
        kv2 = mm(mem, w2[:, E:]) + b2[E:]                          # (S, 2E)
        ca = attend(q2, kv2[:, :E], kv2[:, E:], wo2, bo2, None)
        x2 = layer_norm(x1 + ca, g2, be2)

        # ---- FFN: Linear -> ReLU -> Linear (+ residual + LN); Dropout p=0 is identity ----
        hid = jnp.maximum(mm(x2, wf1[...]) + bf1_[0], 0.0)
        ff = mm(hid, wf2[...]) + bf2_[0]
        x3 = layer_norm(x2 + ff, g3, be3)

        out_ref[...] = x3.astype(out_ref.dtype)

    return kernel


def transformer_decoder_layer(x, memory, params, num_heads):
    """x: (T, B, E), memory: (S, B, E) -> (T, B, E), same as the PyTorch module."""
    T, B, E = x.shape
    S = memory.shape[0]
    assert E % num_heads == 0
    head_dim = E // num_heads
    bf16 = jnp.bfloat16

    (wq1, bq1, wk1, bk1, wv1, bv1, wo1, bo1,
     wq2, bq2, wk2, bk2, wv2, bv2, wo2, bo2,
     wf1, bf1, wf2, bf2, g1, be1, g2, be2, g3, be3) = params

    scale = 1.0 / float(head_dim) ** 0.5

    def fuse_qkv(wq, bq, wk, bk, wv, bv):
        # fold the 1/sqrt(head_dim) softmax scale into the q projection (free, once)
        w = jnp.concatenate([wq * scale, wk, wv], axis=1).astype(bf16)   # (E, 3E) bf16
        b = jnp.concatenate([bq * scale, bk, bv], axis=1)                # (1, 3E) f32
        return w, b

    w_qkv1, b_qkv1 = fuse_qkv(wq1, bq1, wk1, bk1, wv1, bv1)
    w_qkv2, b_qkv2 = fuse_qkv(wq2, bq2, wk2, bk2, wv2, bv2)

    kparams = [
        w_qkv1, b_qkv1, wo1.astype(bf16), bo1,
        w_qkv2, b_qkv2, wo2.astype(bf16), bo2,
        wf1.astype(bf16), bf1, wf2.astype(bf16), bf2,
        g1, be1, g2, be2, g3, be3,
    ]

    kernel = make_decoder_layer_kernel(num_heads, head_dim)

    lane_packed = (E % 128 == 0) or (B == 1)
    if lane_packed:
        # Zero-copy views: (T, B, E) -> (T, B*E); each grid step picks the lane-aligned
        # E-wide column slab of one batch element. No HBM transpose passes.
        x2d = x.reshape(T, B * E)
        m2d = memory.reshape(S, B * E)
        x_spec = pl.BlockSpec((T, E), lambda b: (0, b))
        m_spec = pl.BlockSpec((S, E), lambda b: (0, b))
        o_spec = pl.BlockSpec((T, E), lambda b: (0, b))
        out_2d_shape = (T, B * E)
    else:
        # TODO(synk): fallback (E not a multiple of 128) costs two extra HBM passes for
        #             the batch-major transpose in/out.
        x2d = jnp.transpose(x, (1, 0, 2)).reshape(B * T, E)
        m2d = jnp.transpose(memory, (1, 0, 2)).reshape(B * S, E)
        x_spec = pl.BlockSpec((T, E), lambda b: (b, 0))
        m_spec = pl.BlockSpec((S, E), lambda b: (b, 0))
        o_spec = pl.BlockSpec((T, E), lambda b: (b, 0))
        out_2d_shape = (B * T, E)

    in_specs = [x_spec, m_spec]
    # Weights: constant-index, whole-array blocks (all 2-D).
    # TODO(synk): single-buffer these (pipeline_mode=pl.Buffered(1)) once E/F are large
    #             enough that the doubled weight copies matter on v7x's 64 MiB VMEM.
    in_specs += [pl.BlockSpec(p.shape, lambda b: (0, 0)) for p in kparams]

    # explicit scoped-VMEM budget: double-buffered params + activation blocks + temporaries
    def nbytes(a):
        return int(a.size) * jnp.dtype(a.dtype).itemsize

    F = int(wf1.shape[1])
    weight_bytes = sum(nbytes(p) for p in kparams)
    block_bytes = 4 * E * (2 * T + S)                          # x / out / mem blocks (f32)
    tmp_bytes = 4 * (3 * T * E + 3 * num_heads * T * max(T, S) + T * F + 6 * T * E)
    est = 2 * (weight_bytes + block_bytes) + tmp_bytes
    # TODO(synk): make this clamp generation-aware (up to ~100 MiB on v5e/v6e, <=48 MiB on
    #             v7x) once shapes grow enough for it to matter.
    vmem_limit = int(min(max(est + (4 << 20), 8 << 20), 48 << 20))

    out2d = pl.pallas_call(
        kernel,
        out_shape=jax.ShapeDtypeStruct(out_2d_shape, x.dtype),
        grid=(B,),
        in_specs=in_specs,
        out_specs=o_spec,
        compiler_params=pltpu.CompilerParams(
            dimension_semantics=("parallel",),
            vmem_limit_bytes=vmem_limit),
    )(x2d, m2d, *kparams)

    if lane_packed:
        return out2d.reshape(T, B, E)
    return jnp.transpose(out2d.reshape(B, T, E), (1, 0, 2))


def init_params(key, embed_dim, ffn_dim):
    """Deterministic synthetic parameters; shapes follow the module's __init__.
    Linear weights are stored as (in, out) (i.e. PyTorch weight transposed)."""
    E, F = embed_dim, ffn_dim
    keys = iter(jax.random.split(key, 16))

    def xavier(k, fan_in, fan_out):
        lim = (6.0 / (fan_in + fan_out)) ** 0.5
        return jax.random.uniform(k, (fan_in, fan_out), jnp.float32, -lim, lim)

    params = []
    for _ in range(4):   # self-attention q, k, v, o (biases 0, as in _reset_parameters)
        params += [xavier(next(keys), E, E), jnp.zeros((1, E), jnp.float32)]
    for _ in range(4):   # encoder-decoder attention q, k, v, o
        params += [xavier(next(keys), E, E), jnp.zeros((1, E), jnp.float32)]
    params += [xavier(next(keys), E, F), jnp.zeros((1, F), jnp.float32)]   # FFN Linear(E->F)
    params += [xavier(next(keys), F, E), jnp.zeros((1, E), jnp.float32)]   # FFN Linear(F->E)
    for _ in range(3):   # LayerNorm 1/2/3 (weight=1, bias=0)
        params += [jnp.ones((1, E), jnp.float32), jnp.zeros((1, E), jnp.float32)]
    return params


def ref_decoder_layer(x, memory, params, num_heads):
    """Pure-JAX reference mirroring the PyTorch forward (default mask path) with the same
    precision policy as the kernel: bf16 matmul operands, f32 accumulation, f32 softmax/LN."""
    (wq1, bq1, wk1, bk1, wv1, bv1, wo1, bo1,
     wq2, bq2, wk2, bk2, wv2, bv2, wo2, bo2,
     wf1, bf1, wf2, bf2, g1, be1, g2, be2, g3, be3) = params
    T, B, E = x.shape
    H = num_heads
    hd = E // H
    bf16, f32 = jnp.bfloat16, jnp.float32

    def mm(a, w):
        return jnp.dot(a.astype(bf16), w.astype(bf16), preferred_element_type=f32)

    def linear(a, w, b):
        return mm(a, w) + b[0]

    def ln(a, g, b):
        mu = a.mean(-1, keepdims=True)
        var = ((a - mu) ** 2).mean(-1, keepdims=True)
        return (a - mu) / jnp.sqrt(var + 1e-5) * g[0] + b[0]

    def mha(q_in, kv_in, wq, bq, wk, bk, wv, bv, wo, bo, causal):
        tq, tk = q_in.shape[0], kv_in.shape[0]
        q = linear(q_in, wq, bq).reshape(tq, B, H, hd).transpose(1, 2, 0, 3)
        k = linear(kv_in, wk, bk).reshape(tk, B, H, hd).transpose(1, 2, 0, 3)
        v = linear(kv_in, wv, bv).reshape(tk, B, H, hd).transpose(1, 2, 0, 3)
        logits = jnp.einsum('bhqd,bhkd->bhqk', q.astype(bf16), k.astype(bf16),
                            preferred_element_type=f32) / jnp.sqrt(jnp.float32(hd))
        if causal:
            cm = jnp.triu(jnp.ones((tq, tk), bool), 1)
            logits = jnp.where(cm[None, None], -jnp.inf, logits)
        attn = jax.nn.softmax(logits, axis=-1)
        o = jnp.einsum('bhqk,bhkd->bhqd', attn.astype(bf16), v.astype(bf16),
                       preferred_element_type=f32)
        o = o.transpose(2, 0, 1, 3).reshape(tq, B, E)
        return linear(o, wo, bo)

    sa = mha(x, x, wq1, bq1, wk1, bk1, wv1, bv1, wo1, bo1, True)
    x1 = ln(x + sa, g1, be1)
    ca = mha(x1, memory, wq2, bq2, wk2, bk2, wv2, bv2, wo2, bo2, False)
    x2 = ln(x1 + ca, g2, be2)
    ff = linear(jnp.maximum(linear(x2, wf1, bf1), 0.0), wf2, bf2)
    return ln(x2 + ff, g3, be3)


if __name__ == "__main__":
    EMBED, FFN, HEADS = 128, 256, 4
    TGT_LEN, SRC_LEN, BATCH = 16, 16, 2

    key = jax.random.PRNGKey(0)
    kx, km, kp = jax.random.split(key, 3)
    x = jax.random.normal(kx, (TGT_LEN, BATCH, EMBED), jnp.float32)
    memory = jax.random.normal(km, (SRC_LEN, BATCH, EMBED), jnp.float32)
    params = init_params(kp, EMBED, FFN)

    out = transformer_decoder_layer(x, memory, params, HEADS)
    out = jax.block_until_ready(out)

    ref = ref_decoder_layer(x, memory, params, HEADS)
    assert out.shape == (TGT_LEN, BATCH, EMBED)
    max_err = float(jnp.max(jnp.abs(out - ref)))
    assert jnp.allclose(out, ref, atol=2e-2, rtol=2e-2), max_err

    print("KERNEL_OK")
</pallas_src>

<mosaic_0001>
module attributes {stable_mosaic.version = 11 : i64} {
  func.func @kernel(%arg0: i32, %arg1: memref<16x128xf32, #tpu.memory_space<vmem>>, %arg2: memref<16x128xf32, #tpu.memory_space<vmem>>, %arg3: memref<128x384xbf16, #tpu.memory_space<vmem>>, %arg4: memref<1x384xf32, #tpu.memory_space<vmem>>, %arg5: memref<128x128xbf16, #tpu.memory_space<vmem>>, %arg6: memref<1x128xf32, #tpu.memory_space<vmem>>, %arg7: memref<128x384xbf16, #tpu.memory_space<vmem>>, %arg8: memref<1x384xf32, #tpu.memory_space<vmem>>, %arg9: memref<128x128xbf16, #tpu.memory_space<vmem>>, %arg10: memref<1x128xf32, #tpu.memory_space<vmem>>, %arg11: memref<128x256xbf16, #tpu.memory_space<vmem>>, %arg12: memref<1x256xf32, #tpu.memory_space<vmem>>, %arg13: memref<256x128xbf16, #tpu.memory_space<vmem>>, %arg14: memref<1x128xf32, #tpu.memory_space<vmem>>, %arg15: memref<1x128xf32, #tpu.memory_space<vmem>>, %arg16: memref<1x128xf32, #tpu.memory_space<vmem>>, %arg17: memref<1x128xf32, #tpu.memory_space<vmem>>, %arg18: memref<1x128xf32, #tpu.memory_space<vmem>>, %arg19: memref<1x128xf32, #tpu.memory_space<vmem>>, %arg20: memref<1x128xf32, #tpu.memory_space<vmem>>, %arg21: memref<16x128xf32, #tpu.memory_space<vmem>>) attributes {dimension_semantics = [#tpu.dimension_semantics<parallel>], iteration_bounds = array<i64: 2>, scalar_prefetch = 0 : i64, scratch_operands = 0 : i64, tpu.core_type = #tpu.core_type<tc>, window_params = [{transform_indices = @transform_0, window_bounds = array<i64: 16, 128>}, {transform_indices = @transform_1, window_bounds = array<i64: 16, 128>}, {pipeline_mode = #tpu.pipeline_mode<synchronous>, transform_indices = @transform_2, window_bounds = array<i64: 128, 384>}, {pipeline_mode = #tpu.pipeline_mode<synchronous>, transform_indices = @transform_3, window_bounds = array<i64: 1, 384>}, {pipeline_mode = #tpu.pipeline_mode<synchronous>, transform_indices = @transform_4, window_bounds = array<i64: 128, 128>}, {pipeline_mode = #tpu.pipeline_mode<synchronous>, transform_indices = @transform_5, window_bounds = array<i64: 1, 128>}, {pipeline_mode = #tpu.pipeline_mode<synchronous>, transform_indices = @transform_6, window_bounds = array<i64: 128, 384>}, {pipeline_mode = #tpu.pipeline_mode<synchronous>, transform_indices = @transform_7, window_bounds = array<i64: 1, 384>}, {pipeline_mode = #tpu.pipeline_mode<synchronous>, transform_indices = @transform_8, window_bounds = array<i64: 128, 128>}, {pipeline_mode = #tpu.pipeline_mode<synchronous>, transform_indices = @transform_9, window_bounds = array<i64: 1, 128>}, {pipeline_mode = #tpu.pipeline_mode<synchronous>, transform_indices = @transform_10, window_bounds = array<i64: 128, 256>}, {pipeline_mode = #tpu.pipeline_mode<synchronous>, transform_indices = @transform_11, window_bounds = array<i64: 1, 256>}, {pipeline_mode = #tpu.pipeline_mode<synchronous>, transform_indices = @transform_12, window_bounds = array<i64: 256, 128>}, {pipeline_mode = #tpu.pipeline_mode<synchronous>, transform_indices = @transform_13, window_bounds = array<i64: 1, 128>}, {pipeline_mode = #tpu.pipeline_mode<synchronous>, transform_indices = @transform_14, window_bounds = array<i64: 1, 128>}, {pipeline_mode = #tpu.pipeline_mode<synchronous>, transform_indices = @transform_15, window_bounds = array<i64: 1, 128>}, {pipeline_mode = #tpu.pipeline_mode<synchronous>, transform_indices = @transform_16, window_bounds = array<i64: 1, 128>}, {pipeline_mode = #tpu.pipeline_mode<synchronous>, transform_indices = @transform_17, window_bounds = array<i64: 1, 128>}, {pipeline_mode = #tpu.pipeline_mode<synchronous>, transform_indices = @transform_18, window_bounds = array<i64: 1, 128>}, {pipeline_mode = #tpu.pipeline_mode<synchronous>, transform_indices = @transform_19, window_bounds = array<i64: 1, 128>}, {transform_indices = @transform_20, window_bounds = array<i64: 16, 128>}]} {
    %c0 = arith.constant 0 : index
    %c0_0 = arith.constant 0 : index
    %0 = vector.load %arg1[%c0, %c0_0] : memref<16x128xf32, #tpu.memory_space<vmem>>, vector<16x128xf32>
    %c0_1 = arith.constant 0 : index
    %c0_2 = arith.constant 0 : index
    %1 = vector.load %arg2[%c0_1, %c0_2] : memref<16x128xf32, #tpu.memory_space<vmem>>, vector<16x128xf32>
    %2 = tpu.iota {dimensions = array<i32: 0>} : vector<16x16xi32>
    %3 = tpu.iota {dimensions = array<i32: 1>} : vector<16x16xi32>
    %4 = arith.cmpi sgt, %3, %2 : vector<16x16xi32>
    %c0_3 = arith.constant 0 : index
    %c0_4 = arith.constant 0 : index
    %5 = vector.load %arg3[%c0_3, %c0_4] : memref<128x384xbf16, #tpu.memory_space<vmem>>, vector<128x384xbf16>
    %6 = arith.truncf %0 : vector<16x128xf32> to vector<16x128xbf16>
    %cst = arith.constant dense<0.000000e+00> : vector<16x384xf32>
    %7 = tpu.matmul %6, %5, %cst {dimension_numbers = #tpu.dot_dimension_numbers<[1], [0], [0], [1], [0, 0, 1, 1], [], []>} : vector<16x128xbf16>, vector<128x384xbf16>, vector<16x384xf32> -> vector<16x384xf32>
    %c0_5 = arith.constant 0 : index
    %c0_6 = arith.constant 0 : index
    %8 = vector.load %arg4[%c0_5, %c0_6] : memref<1x384xf32, #tpu.memory_space<vmem>>, vector<1x384xf32>
    %9 = vector.shape_cast %8 : vector<1x384xf32> to vector<384xf32>
    %10 = vector.shape_cast %9 : vector<384xf32> to vector<1x384xf32>
    %11 = vector.broadcast %10 : vector<1x384xf32> to vector<16x384xf32>
    %12 = arith.addf %7, %11 : vector<16x384xf32>
    %13 = vector.extract_strided_slice %12 {offsets = [0, 0], sizes = [16, 128], strides = [1, 1]} : vector<16x384xf32> to vector<16x128xf32>
    %14 = vector.extract_strided_slice %12 {offsets = [0, 128], sizes = [16, 128], strides = [1, 1]} : vector<16x384xf32> to vector<16x128xf32>
    %15 = vector.extract_strided_slice %12 {offsets = [0, 256], sizes = [16, 128], strides = [1, 1]} : vector<16x384xf32> to vector<16x128xf32>
    %16 = vector.extract_strided_slice %13 {offsets = [0, 0], sizes = [16, 32], strides = [1, 1]} : vector<16x128xf32> to vector<16x32xf32>
    %17 = vector.extract_strided_slice %13 {offsets = [0, 32], sizes = [16, 32], strides = [1, 1]} : vector<16x128xf32> to vector<16x32xf32>
    %18 = vector.extract_strided_slice %13 {offsets = [0, 64], sizes = [16, 32], strides = [1, 1]} : vector<16x128xf32> to vector<16x32xf32>
    %19 = vector.extract_strided_slice %13 {offsets = [0, 96], sizes = [16, 32], strides = [1, 1]} : vector<16x128xf32> to vector<16x32xf32>
    %20 = vector.shape_cast %16 : vector<16x32xf32> to vector<1x16x32xf32>
    %21 = vector.shape_cast %17 : vector<16x32xf32> to vector<1x16x32xf32>
    %22 = vector.shape_cast %18 : vector<16x32xf32> to vector<1x16x32xf32>
    %23 = vector.shape_cast %19 : vector<16x32xf32> to vector<1x16x32xf32>
    %24 = tpu.concatenate %20, %21, %22, %23 in 0 : vector<1x16x32xf32>, vector<1x16x32xf32>, vector<1x16x32xf32>, vector<1x16x32xf32> -> vector<4x16x32xf32>
    %25 = arith.truncf %24 : vector<4x16x32xf32> to vector<4x16x32xbf16>
    %26 = vector.extract_strided_slice %14 {offsets = [0, 0], sizes = [16, 32], strides = [1, 1]} : vector<16x128xf32> to vector<16x32xf32>
    %27 = vector.extract_strided_slice %14 {offsets = [0, 32], sizes = [16, 32], strides = [1, 1]} : vector<16x128xf32> to vector<16x32xf32>
    %28 = vector.extract_strided_slice %14 {offsets = [0, 64], sizes = [16, 32], strides = [1, 1]} : vector<16x128xf32> to vector<16x32xf32>
    %29 = vector.extract_strided_slice %14 {offsets = [0, 96], sizes = [16, 32], strides = [1, 1]} : vector<16x128xf32> to vector<16x32xf32>
    %30 = vector.shape_cast %26 : vector<16x32xf32> to vector<1x16x32xf32>
    %31 = vector.shape_cast %27 : vector<16x32xf32> to vector<1x16x32xf32>
    %32 = vector.shape_cast %28 : vector<16x32xf32> to vector<1x16x32xf32>
    %33 = vector.shape_cast %29 : vector<16x32xf32> to vector<1x16x32xf32>
    %34 = tpu.concatenate %30, %31, %32, %33 in 0 : vector<1x16x32xf32>, vector<1x16x32xf32>, vector<1x16x32xf32>, vector<1x16x32xf32> -> vector<4x16x32xf32>
    %35 = arith.truncf %34 : vector<4x16x32xf32> to vector<4x16x32xbf16>
    %36 = vector.extract_strided_slice %15 {offsets = [0, 0], sizes = [16, 32], strides = [1, 1]} : vector<16x128xf32> to vector<16x32xf32>
    %37 = vector.extract_strided_slice %15 {offsets = [0, 32], sizes = [16, 32], strides = [1, 1]} : vector<16x128xf32> to vector<16x32xf32>
    %38 = vector.extract_strided_slice %15 {offsets = [0, 64], sizes = [16, 32], strides = [1, 1]} : vector<16x128xf32> to vector<16x32xf32>
    %39 = vector.extract_strided_slice %15 {offsets = [0, 96], sizes = [16, 32], strides = [1, 1]} : vector<16x128xf32> to vector<16x32xf32>
    %40 = vector.shape_cast %36 : vector<16x32xf32> to vector<1x16x32xf32>
    %41 = vector.shape_cast %37 : vector<16x32xf32> to vector<1x16x32xf32>
    %42 = vector.shape_cast %38 : vector<16x32xf32> to vector<1x16x32xf32>
    %43 = vector.shape_cast %39 : vector<16x32xf32> to vector<1x16x32xf32>
    %44 = tpu.concatenate %40, %41, %42, %43 in 0 : vector<1x16x32xf32>, vector<1x16x32xf32>, vector<1x16x32xf32>, vector<1x16x32xf32> -> vector<4x16x32xf32>
    %45 = arith.truncf %44 : vector<4x16x32xf32> to vector<4x16x32xbf16>
    "tpu.trace_start"() <{level = 10 : i32, message = "hqd,hkd->hqk"}> : () -> ()
    %cst_7 = arith.constant dense<0.000000e+00> : vector<4x16x16xf32>
    %46 = tpu.matmul %25, %35, %cst_7 {dimension_numbers = #tpu.dot_dimension_numbers<[2], [2], [1], [1], [0, 0, 0, 1, 1, 1], [0], [0]>} : vector<4x16x32xbf16>, vector<4x16x32xbf16>, vector<4x16x16xf32> -> vector<4x16x16xf32>
    "tpu.trace_stop"() : () -> ()
    %47 = vector.shape_cast %4 : vector<16x16xi1> to vector<1x16x16xi1>
    %cst_8 = arith.constant -1.000000e+30 : f32
    %48 = vector.shape_cast %47 : vector<1x16x16xi1> to vector<1x16x16xi1>
    %49 = vector.broadcast %48 : vector<1x16x16xi1> to vector<4x16x16xi1>
    %50 = vector.broadcast %cst_8 : f32 to vector<4x16x16xf32>
    %51 = arith.select %49, %50, %46 : vector<4x16x16xi1>, vector<4x16x16xf32>
    %cst_9 = arith.constant dense<0xFF800000> : vector<4x16xf32>
    %52 = vector.multi_reduction <maximumf>, %51, %cst_9 [2] : vector<4x16x16xf32> to vector<4x16xf32>
    %53 = vector.shape_cast %52 : vector<4x16xf32> to vector<4x16x1xf32>
    %54 = vector.broadcast %53 : vector<4x16x1xf32> to vector<4x16x16xf32>
    %55 = arith.subf %51, %54 : vector<4x16x16xf32>
    %56 = math.exp %55 : vector<4x16x16xf32>
    %cst_10 = arith.constant dense<0.000000e+00> : vector<4x16xf32>
    %57 = vector.multi_reduction <add>, %56, %cst_10 [2] : vector<4x16x16xf32> to vector<4x16xf32>
    %58 = vector.shape_cast %57 : vector<4x16xf32> to vector<4x16x1xf32>
    %59 = tpu.reciprocal %58 {approx = true} : vector<4x16x1xf32> -> vector<4x16x1xf32>
    %60 = vector.broadcast %59 : vector<4x16x1xf32> to vector<4x16x16xf32>
    %61 = arith.mulf %56, %60 : vector<4x16x16xf32>
    %62 = arith.truncf %61 : vector<4x16x16xf32> to vector<4x16x16xbf16>
    "tpu.trace_start"() <{level = 10 : i32, message = "hqk,hkd->hqd"}> : () -> ()
    %cst_11 = arith.constant dense<0.000000e+00> : vector<4x16x32xf32>
    %63 = tpu.matmul %62, %45, %cst_11 {dimension_numbers = #tpu.dot_dimension_numbers<[2], [1], [1], [2], [0, 0, 0, 1, 1, 2], [0], [0]>} : vector<4x16x16xbf16>, vector<4x16x32xbf16>, vector<4x16x32xf32> -> vector<4x16x32xf32>
    "tpu.trace_stop"() : () -> ()
    %64 = vector.extract_strided_slice %63 {offsets = [0, 0, 0], sizes = [1, 16, 32], strides = [1, 1, 1]} : vector<4x16x32xf32> to vector<1x16x32xf32>
    %65 = vector.shape_cast %64 : vector<1x16x32xf32> to vector<16x32xf32>
    %66 = vector.extract_strided_slice %63 {offsets = [1, 0, 0], sizes = [1, 16, 32], strides = [1, 1, 1]} : vector<4x16x32xf32> to vector<1x16x32xf32>
    %67 = vector.shape_cast %66 : vector<1x16x32xf32> to vector<16x32xf32>
    %68 = vector.extract_strided_slice %63 {offsets = [2, 0, 0], sizes = [1, 16, 32], strides = [1, 1, 1]} : vector<4x16x32xf32> to vector<1x16x32xf32>
    %69 = vector.shape_cast %68 : vector<1x16x32xf32> to vector<16x32xf32>
    %70 = vector.extract_strided_slice %63 {offsets = [3, 0, 0], sizes = [1, 16, 32], strides = [1, 1, 1]} : vector<4x16x32xf32> to vector<1x16x32xf32>
    %71 = vector.shape_cast %70 : vector<1x16x32xf32> to vector<16x32xf32>
    %72 = tpu.concatenate %65, %67, %69, %71 in 1 : vector<16x32xf32>, vector<16x32xf32>, vector<16x32xf32>, vector<16x32xf32> -> vector<16x128xf32>
    %c0_12 = arith.constant 0 : index
    %c0_13 = arith.constant 0 : index
    %73 = vector.load %arg5[%c0_12, %c0_13] : memref<128x128xbf16, #tpu.memory_space<vmem>>, vector<128x128xbf16>
    %74 = arith.truncf %72 : vector<16x128xf32> to vector<16x128xbf16>
    %cst_14 = arith.constant dense<0.000000e+00> : vector<16x128xf32>
    %75 = tpu.matmul %74, %73, %cst_14 {dimension_numbers = #tpu.dot_dimension_numbers<[1], [0], [0], [1], [0, 0, 1, 1], [], []>} : vector<16x128xbf16>, vector<128x128xbf16>, vector<16x128xf32> -> vector<16x128xf32>
    %c0_15 = arith.constant 0 : index
    %c0_16 = arith.constant 0 : index
    %76 = vector.load %arg6[%c0_15, %c0_16] : memref<1x128xf32, #tpu.memory_space<vmem>>, vector<1x128xf32>
    %77 = vector.shape_cast %76 : vector<1x128xf32> to vector<128xf32>
    %78 = vector.shape_cast %77 : vector<128xf32> to vector<1x128xf32>
    %79 = vector.broadcast %78 : vector<1x128xf32> to vector<16x128xf32>
    %80 = arith.addf %75, %79 : vector<16x128xf32>
    %81 = arith.addf %0, %80 : vector<16x128xf32>
    %cst_17 = arith.constant dense<0.000000e+00> : vector<16xf32>
    %82 = vector.multi_reduction <add>, %81, %cst_17 [1] : vector<16x128xf32> to vector<16xf32>
    %83 = vector.shape_cast %82 : vector<16xf32> to vector<16x1xf32>
    %cst_18 = arith.constant 1.280000e+02 : f32
    %84 = vector.broadcast %cst_18 : f32 to vector<16x1xf32>
    %85 = arith.divf %83, %84 : vector<16x1xf32>
    %86 = vector.broadcast %85 : vector<16x1xf32> to vector<16x128xf32>
    %87 = arith.subf %81, %86 : vector<16x128xf32>
    %88 = arith.mulf %87, %87 : vector<16x128xf32>
    %cst_19 = arith.constant dense<0.000000e+00> : vector<16xf32>
    %89 = vector.multi_reduction <add>, %88, %cst_19 [1] : vector<16x128xf32> to vector<16xf32>
    %90 = vector.shape_cast %89 : vector<16xf32> to vector<16x1xf32>
    %cst_20 = arith.constant 1.280000e+02 : f32
    %91 = vector.broadcast %cst_20 : f32 to vector<16x1xf32>
    %92 = arith.divf %90, %91 : vector<16x1xf32>
    %93 = vector.broadcast %85 : vector<16x1xf32> to vector<16x128xf32>
    %94 = arith.subf %81, %93 : vector<16x128xf32>
    %cst_21 = arith.constant 9.99999974E-6 : f32
    %95 = vector.broadcast %cst_21 : f32 to vector<16x1xf32>
    %96 = arith.addf %92, %95 : vector<16x1xf32>
    %97 = math.rsqrt %96 : vector<16x1xf32>
    %98 = vector.broadcast %97 : vector<16x1xf32> to vector<16x128xf32>
    %99 = arith.mulf %94, %98 : vector<16x128xf32>
    %c0_22 = arith.constant 0 : index
    %c0_23 = arith.constant 0 : index
    %100 = vector.load %arg15[%c0_22, %c0_23] : memref<1x128xf32, #tpu.memory_space<vmem>>, vector<1x128xf32>
    %101 = vector.shape_cast %100 : vector<1x128xf32> to vector<128xf32>
    %102 = vector.shape_cast %101 : vector<128xf32> to vector<1x128xf32>
    %103 = vector.broadcast %102 : vector<1x128xf32> to vector<16x128xf32>
    %104 = arith.mulf %99, %103 : vector<16x128xf32>
    %c0_24 = arith.constant 0 : index
    %c0_25 = arith.constant 0 : index
    %105 = vector.load %arg16[%c0_24, %c0_25] : memref<1x128xf32, #tpu.memory_space<vmem>>, vector<1x128xf32>
    %106 = vector.shape_cast %105 : vector<1x128xf32> to vector<128xf32>
    %107 = vector.shape_cast %106 : vector<128xf32> to vector<1x128xf32>
    %108 = vector.broadcast %107 : vector<1x128xf32> to vector<16x128xf32>
    %109 = arith.addf %104, %108 : vector<16x128xf32>
    %c0_26 = arith.constant 0 : index
    %c0_27 = arith.constant 0 : index
    %110 = vector.load %arg7[%c0_26, %c0_27] : memref<128x384xbf16, #tpu.memory_space<vmem>>, vector<128x384xbf16>
    %c0_28 = arith.constant 0 : index
    %c0_29 = arith.constant 0 : index
    %111 = vector.load %arg8[%c0_28, %c0_29] : memref<1x384xf32, #tpu.memory_space<vmem>>, vector<1x384xf32>
    %112 = vector.shape_cast %111 : vector<1x384xf32> to vector<384xf32>
    %113 = vector.extract_strided_slice %110 {offsets = [0, 0], sizes = [128, 128], strides = [1, 1]} : vector<128x384xbf16> to vector<128x128xbf16>
    %114 = arith.truncf %109 : vector<16x128xf32> to vector<16x128xbf16>
    %cst_30 = arith.constant dense<0.000000e+00> : vector<16x128xf32>
    %115 = tpu.matmul %114, %113, %cst_30 {dimension_numbers = #tpu.dot_dimension_numbers<[1], [0], [0], [1], [0, 0, 1, 1], [], []>} : vector<16x128xbf16>, vector<128x128xbf16>, vector<16x128xf32> -> vector<16x128xf32>
    %116 = vector.extract_strided_slice %112 {offsets = [0], sizes = [128], strides = [1]} : vector<384xf32> to vector<128xf32>
    %117 = vector.shape_cast %116 : vector<128xf32> to vector<1x128xf32>
    %118 = vector.broadcast %117 : vector<1x128xf32> to vector<16x128xf32>
    %119 = arith.addf %115, %118 : vector<16x128xf32>
    %120 = vector.extract_strided_slice %110 {offsets = [0, 128], sizes = [128, 256], strides = [1, 1]} : vector<128x384xbf16> to vector<128x256xbf16>
    %121 = arith.truncf %1 : vector<16x128xf32> to vector<16x128xbf16>
    %cst_31 = arith.constant dense<0.000000e+00> : vector<16x256xf32>
    %122 = tpu.matmul %121, %120, %cst_31 {dimension_numbers = #tpu.dot_dimension_numbers<[1], [0], [0], [1], [0, 0, 1, 1], [], []>} : vector<16x128xbf16>, vector<128x256xbf16>, vector<16x256xf32> -> vector<16x256xf32>
    %123 = vector.extract_strided_slice %112 {offsets = [128], sizes = [256], strides = [1]} : vector<384xf32> to vector<256xf32>
    %124 = vector.shape_cast %123 : vector<256xf32> to vector<1x256xf32>
    %125 = vector.broadcast %124 : vector<1x256xf32> to vector<16x256xf32>
    %126 = arith.addf %122, %125 : vector<16x256xf32>
    %127 = vector.extract_strided_slice %126 {offsets = [0, 0], sizes = [16, 128], strides = [1, 1]} : vector<16x256xf32> to vector<16x128xf32>
    %128 = vector.extract_strided_slice %126 {offsets = [0, 128], sizes = [16, 128], strides = [1, 1]} : vector<16x256xf32> to vector<16x128xf32>
    %129 = vector.extract_strided_slice %119 {offsets = [0, 0], sizes = [16, 32], strides = [1, 1]} : vector<16x128xf32> to vector<16x32xf32>
    %130 = vector.extract_strided_slice %119 {offsets = [0, 32], sizes = [16, 32], strides = [1, 1]} : vector<16x128xf32> to vector<16x32xf32>
    %131 = vector.extract_strided_slice %119 {offsets = [0, 64], sizes = [16, 32], strides = [1, 1]} : vector<16x128xf32> to vector<16x32xf32>
    %132 = vector.extract_strided_slice %119 {offsets = [0, 96], sizes = [16, 32], strides = [1, 1]} : vector<16x128xf32> to vector<16x32xf32>
    %133 = vector.shape_cast %129 : vector<16x32xf32> to vector<1x16x32xf32>
    %134 = vector.shape_cast %130 : vector<16x32xf32> to vector<1x16x32xf32>
    %135 = vector.shape_cast %131 : vector<16x32xf32> to vector<1x16x32xf32>
    %136 = vector.shape_cast %132 : vector<16x32xf32> to vector<1x16x32xf32>
    %137 = tpu.concatenate %133, %134, %135, %136 in 0 : vector<1x16x32xf32>, vector<1x16x32xf32>, vector<1x16x32xf32>, vector<1x16x32xf32> -> vector<4x16x32xf32>
    %138 = arith.truncf %137 : vector<4x16x32xf32> to vector<4x16x32xbf16>
    %139 = vector.extract_strided_slice %127 {offsets = [0, 0], sizes = [16, 32], strides = [1, 1]} : vector<16x128xf32> to vector<16x32xf32>
    %140 = vector.extract_strided_slice %127 {offsets = [0, 32], sizes = [16, 32], strides = [1, 1]} : vector<16x128xf32> to vector<16x32xf32>
    %141 = vector.extract_strided_slice %127 {offsets = [0, 64], sizes = [16, 32], strides = [1, 1]} : vector<16x128xf32> to vector<16x32xf32>
    %142 = vector.extract_strided_slice %127 {offsets = [0, 96], sizes = [16, 32], strides = [1, 1]} : vector<16x128xf32> to vector<16x32xf32>
    %143 = vector.shape_cast %139 : vector<16x32xf32> to vector<1x16x32xf32>
    %144 = vector.shape_cast %140 : vector<16x32xf32> to vector<1x16x32xf32>
    %145 = vector.shape_cast %141 : vector<16x32xf32> to vector<1x16x32xf32>
    %146 = vector.shape_cast %142 : vector<16x32xf32> to vector<1x16x32xf32>
    %147 = tpu.concatenate %143, %144, %145, %146 in 0 : vector<1x16x32xf32>, vector<1x16x32xf32>, vector<1x16x32xf32>, vector<1x16x32xf32> -> vector<4x16x32xf32>
    %148 = arith.truncf %147 : vector<4x16x32xf32> to vector<4x16x32xbf16>
    %149 = vector.extract_strided_slice %128 {offsets = [0, 0], sizes = [16, 32], strides = [1, 1]} : vector<16x128xf32> to vector<16x32xf32>
    %150 = vector.extract_strided_slice %128 {offsets = [0, 32], sizes = [16, 32], strides = [1, 1]} : vector<16x128xf32> to vector<16x32xf32>
    %151 = vector.extract_strided_slice %128 {offsets = [0, 64], sizes = [16, 32], strides = [1, 1]} : vector<16x128xf32> to vector<16x32xf32>
    %152 = vector.extract_strided_slice %128 {offsets = [0, 96], sizes = [16, 32], strides = [1, 1]} : vector<16x128xf32> to vector<16x32xf32>
    %153 = vector.shape_cast %149 : vector<16x32xf32> to vector<1x16x32xf32>
    %154 = vector.shape_cast %150 : vector<16x32xf32> to vector<1x16x32xf32>
    %155 = vector.shape_cast %151 : vector<16x32xf32> to vector<1x16x32xf32>
    %156 = vector.shape_cast %152 : vector<16x32xf32> to vector<1x16x32xf32>
    %157 = tpu.concatenate %153, %154, %155, %156 in 0 : vector<1x16x32xf32>, vector<1x16x32xf32>, vector<1x16x32xf32>, vector<1x16x32xf32> -> vector<4x16x32xf32>
    %158 = arith.truncf %157 : vector<4x16x32xf32> to vector<4x16x32xbf16>
    "tpu.trace_start"() <{level = 10 : i32, message = "hqd,hkd->hqk"}> : () -> ()
    %cst_32 = arith.constant dense<0.000000e+00> : vector<4x16x16xf32>
    %159 = tpu.matmul %138, %148, %cst_32 {dimension_numbers = #tpu.dot_dimension_numbers<[2], [2], [1], [1], [0, 0, 0, 1, 1, 1], [0], [0]>} : vector<4x16x32xbf16>, vector<4x16x32xbf16>, vector<4x16x16xf32> -> vector<4x16x16xf32>
    "tpu.trace_stop"() : () -> ()
    %cst_33 = arith.constant dense<0xFF800000> : vector<4x16xf32>
    %160 = vector.multi_reduction <maximumf>, %159, %cst_33 [2] : vector<4x16x16xf32> to vector<4x16xf32>
    %161 = vector.shape_cast %160 : vector<4x16xf32> to vector<4x16x1xf32>
    %162 = vector.broadcast %161 : vector<4x16x1xf32> to vector<4x16x16xf32>
    %163 = arith.subf %159, %162 : vector<4x16x16xf32>
    %164 = math.exp %163 : vector<4x16x16xf32>
    %cst_34 = arith.constant dense<0.000000e+00> : vector<4x16xf32>
    %165 = vector.multi_reduction <add>, %164, %cst_34 [2] : vector<4x16x16xf32> to vector<4x16xf32>
    %166 = vector.shape_cast %165 : vector<4x16xf32> to vector<4x16x1xf32>
    %167 = tpu.reciprocal %166 {approx = true} : vector<4x16x1xf32> -> vector<4x16x1xf32>
    %168 = vector.broadcast %167 : vector<4x16x1xf32> to vector<4x16x16xf32>
    %169 = arith.mulf %164, %168 : vector<4x16x16xf32>
    %170 = arith.truncf %169 : vector<4x16x16xf32> to vector<4x16x16xbf16>
    "tpu.trace_start"() <{level = 10 : i32, message = "hqk,hkd->hqd"}> : () -> ()
    %cst_35 = arith.constant dense<0.000000e+00> : vector<4x16x32xf32>
    %171 = tpu.matmul %170, %158, %cst_35 {dimension_numbers = #tpu.dot_dimension_numbers<[2], [1], [1], [2], [0, 0, 0, 1, 1, 2], [0], [0]>} : vector<4x16x16xbf16>, vector<4x16x32xbf16>, vector<4x16x32xf32> -> vector<4x16x32xf32>
    "tpu.trace_stop"() : () -> ()
    %172 = vector.extract_strided_slice %171 {offsets = [0, 0, 0], sizes = [1, 16, 32], strides = [1, 1, 1]} : vector<4x16x32xf32> to vector<1x16x32xf32>
    %173 = vector.shape_cast %172 : vector<1x16x32xf32> to vector<16x32xf32>
    %174 = vector.extract_strided_slice %171 {offsets = [1, 0, 0], sizes = [1, 16, 32], strides = [1, 1, 1]} : vector<4x16x32xf32> to vector<1x16x32xf32>
    %175 = vector.shape_cast %174 : vector<1x16x32xf32> to vector<16x32xf32>
    %176 = vector.extract_strided_slice %171 {offsets = [2, 0, 0], sizes = [1, 16, 32], strides = [1, 1, 1]} : vector<4x16x32xf32> to vector<1x16x32xf32>
    %177 = vector.shape_cast %176 : vector<1x16x32xf32> to vector<16x32xf32>
    %178 = vector.extract_strided_slice %171 {offsets = [3, 0, 0], sizes = [1, 16, 32], strides = [1, 1, 1]} : vector<4x16x32xf32> to vector<1x16x32xf32>
    %179 = vector.shape_cast %178 : vector<1x16x32xf32> to vector<16x32xf32>
    %180 = tpu.concatenate %173, %175, %177, %179 in 1 : vector<16x32xf32>, vector<16x32xf32>, vector<16x32xf32>, vector<16x32xf32> -> vector<16x128xf32>
    %c0_36 = arith.constant 0 : index
    %c0_37 = arith.constant 0 : index
    %181 = vector.load %arg9[%c0_36, %c0_37] : memref<128x128xbf16, #tpu.memory_space<vmem>>, vector<128x128xbf16>
    %182 = arith.truncf %180 : vector<16x128xf32> to vector<16x128xbf16>
    %cst_38 = arith.constant dense<0.000000e+00> : vector<16x128xf32>
    %183 = tpu.matmul %182, %181, %cst_38 {dimension_numbers = #tpu.dot_dimension_numbers<[1], [0], [0], [1], [0, 0, 1, 1], [], []>} : vector<16x128xbf16>, vector<128x128xbf16>, vector<16x128xf32> -> vector<16x128xf32>
    %c0_39 = arith.constant 0 : index
    %c0_40 = arith.constant 0 : index
    %184 = vector.load %arg10[%c0_39, %c0_40] : memref<1x128xf32, #tpu.memory_space<vmem>>, vector<1x128xf32>
    %185 = vector.shape_cast %184 : vector<1x128xf32> to vector<128xf32>
    %186 = vector.shape_cast %185 : vector<128xf32> to vector<1x128xf32>
    %187 = vector.broadcast %186 : vector<1x128xf32> to vector<16x128xf32>
    %188 = arith.addf %183, %187 : vector<16x128xf32>
    %189 = arith.addf %109, %188 : vector<16x128xf32>
    %cst_41 = arith.constant dense<0.000000e+00> : vector<16xf32>
    %190 = vector.multi_reduction <add>, %189, %cst_41 [1] : vector<16x128xf32> to vector<16xf32>
    %191 = vector.shape_cast %190 : vector<16xf32> to vector<16x1xf32>
    %cst_42 = arith.constant 1.280000e+02 : f32
    %192 = vector.broadcast %cst_42 : f32 to vector<16x1xf32>
    %193 = arith.divf %191, %192 : vector<16x1xf32>
    %194 = vector.broadcast %193 : vector<16x1xf32> to vector<16x128xf32>
    %195 = arith.subf %189, %194 : vector<16x128xf32>
    %196 = arith.mulf %195, %195 : vector<16x128xf32>
    %cst_43 = arith.constant dense<0.000000e+00> : vector<16xf32>
    %197 = vector.multi_reduction <add>, %196, %cst_43 [1] : vector<16x128xf32> to vector<16xf32>
    %198 = vector.shape_cast %197 : vector<16xf32> to vector<16x1xf32>
    %cst_44 = arith.constant 1.280000e+02 : f32
    %199 = vector.broadcast %cst_44 : f32 to vector<16x1xf32>
    %200 = arith.divf %198, %199 : vector<16x1xf32>
    %201 = vector.broadcast %193 : vector<16x1xf32> to vector<16x128xf32>
    %202 = arith.subf %189, %201 : vector<16x128xf32>
    %cst_45 = arith.constant 9.99999974E-6 : f32
    %203 = vector.broadcast %cst_45 : f32 to vector<16x1xf32>
    %204 = arith.addf %200, %203 : vector<16x1xf32>
    %205 = math.rsqrt %204 : vector<16x1xf32>
    %206 = vector.broadcast %205 : vector<16x1xf32> to vector<16x128xf32>
    %207 = arith.mulf %202, %206 : vector<16x128xf32>
    %c0_46 = arith.constant 0 : index
    %c0_47 = arith.constant 0 : index
    %208 = vector.load %arg17[%c0_46, %c0_47] : memref<1x128xf32, #tpu.memory_space<vmem>>, vector<1x128xf32>
    %209 = vector.shape_cast %208 : vector<1x128xf32> to vector<128xf32>
    %210 = vector.shape_cast %209 : vector<128xf32> to vector<1x128xf32>
    %211 = vector.broadcast %210 : vector<1x128xf32> to vector<16x128xf32>
    %212 = arith.mulf %207, %211 : vector<16x128xf32>
    %c0_48 = arith.constant 0 : index
    %c0_49 = arith.constant 0 : index
    %213 = vector.load %arg18[%c0_48, %c0_49] : memref<1x128xf32, #tpu.memory_space<vmem>>, vector<1x128xf32>
    %214 = vector.shape_cast %213 : vector<1x128xf32> to vector<128xf32>
    %215 = vector.shape_cast %214 : vector<128xf32> to vector<1x128xf32>
    %216 = vector.broadcast %215 : vector<1x128xf32> to vector<16x128xf32>
    %217 = arith.addf %212, %216 : vector<16x128xf32>
    %c0_50 = arith.constant 0 : index
    %c0_51 = arith.constant 0 : index
    %218 = vector.load %arg11[%c0_50, %c0_51] : memref<128x256xbf16, #tpu.memory_space<vmem>>, vector<128x256xbf16>
    %219 = arith.truncf %217 : vector<16x128xf32> to vector<16x128xbf16>
    %cst_52 = arith.constant dense<0.000000e+00> : vector<16x256xf32>
    %220 = tpu.matmul %219, %218, %cst_52 {dimension_numbers = #tpu.dot_dimension_numbers<[1], [0], [0], [1], [0, 0, 1, 1], [], []>} : vector<16x128xbf16>, vector<128x256xbf16>, vector<16x256xf32> -> vector<16x256xf32>
    %c0_53 = arith.constant 0 : index
    %c0_54 = arith.constant 0 : index
    %221 = vector.load %arg12[%c0_53, %c0_54] : memref<1x256xf32, #tpu.memory_space<vmem>>, vector<1x256xf32>
    %222 = vector.shape_cast %221 : vector<1x256xf32> to vector<256xf32>
    %223 = vector.shape_cast %222 : vector<256xf32> to vector<1x256xf32>
    %224 = vector.broadcast %223 : vector<1x256xf32> to vector<16x256xf32>
    %225 = arith.addf %220, %224 : vector<16x256xf32>
    %cst_55 = arith.constant 0.000000e+00 : f32
    %226 = vector.broadcast %cst_55 : f32 to vector<16x256xf32>
    %227 = arith.maximumf %225, %226 : vector<16x256xf32>
    %c0_56 = arith.constant 0 : index
    %c0_57 = arith.constant 0 : index
    %228 = vector.load %arg13[%c0_56, %c0_57] : memref<256x128xbf16, #tpu.memory_space<vmem>>, vector<256x128xbf16>
    %229 = arith.truncf %227 : vector<16x256xf32> to vector<16x256xbf16>
    %cst_58 = arith.constant dense<0.000000e+00> : vector<16x128xf32>
    %230 = tpu.matmul %229, %228, %cst_58 {dimension_numbers = #tpu.dot_dimension_numbers<[1], [0], [0], [1], [0, 0, 1, 1], [], []>} : vector<16x256xbf16>, vector<256x128xbf16>, vector<16x128xf32> -> vector<16x128xf32>
    %c0_59 = arith.constant 0 : index
    %c0_60 = arith.constant 0 : index
    %231 = vector.load %arg14[%c0_59, %c0_60] : memref<1x128xf32, #tpu.memory_space<vmem>>, vector<1x128xf32>
    %232 = vector.shape_cast %231 : vector<1x128xf32> to vector<128xf32>
    %233 = vector.shape_cast %232 : vector<128xf32> to vector<1x128xf32>
    %234 = vector.broadcast %233 : vector<1x128xf32> to vector<16x128xf32>
    %235 = arith.addf %230, %234 : vector<16x128xf32>
    %236 = arith.addf %217, %235 : vector<16x128xf32>
    %cst_61 = arith.constant dense<0.000000e+00> : vector<16xf32>
    %237 = vector.multi_reduction <add>, %236, %cst_61 [1] : vector<16x128xf32> to vector<16xf32>
    %238 = vector.shape_cast %237 : vector<16xf32> to vector<16x1xf32>
    %cst_62 = arith.constant 1.280000e+02 : f32
    %239 = vector.broadcast %cst_62 : f32 to vector<16x1xf32>
    %240 = arith.divf %238, %239 : vector<16x1xf32>
    %241 = vector.broadcast %240 : vector<16x1xf32> to vector<16x128xf32>
    %242 = arith.subf %236, %241 : vector<16x128xf32>
    %243 = arith.mulf %242, %242 : vector<16x128xf32>
    %cst_63 = arith.constant dense<0.000000e+00> : vector<16xf32>
    %244 = vector.multi_reduction <add>, %243, %cst_63 [1] : vector<16x128xf32> to vector<16xf32>
    %245 = vector.shape_cast %244 : vector<16xf32> to vector<16x1xf32>
    %cst_64 = arith.constant 1.280000e+02 : f32
    %246 = vector.broadcast %cst_64 : f32 to vector<16x1xf32>
    %247 = arith.divf %245, %246 : vector<16x1xf32>
    %248 = vector.broadcast %240 : vector<16x1xf32> to vector<16x128xf32>
    %249 = arith.subf %236, %248 : vector<16x128xf32>
    %cst_65 = arith.constant 9.99999974E-6 : f32
    %250 = vector.broadcast %cst_65 : f32 to vector<16x1xf32>
    %251 = arith.addf %247, %250 : vector<16x1xf32>
    %252 = math.rsqrt %251 : vector<16x1xf32>
    %253 = vector.broadcast %252 : vector<16x1xf32> to vector<16x128xf32>
    %254 = arith.mulf %249, %253 : vector<16x128xf32>
    %c0_66 = arith.constant 0 : index
    %c0_67 = arith.constant 0 : index
    %255 = vector.load %arg19[%c0_66, %c0_67] : memref<1x128xf32, #tpu.memory_space<vmem>>, vector<1x128xf32>
    %256 = vector.shape_cast %255 : vector<1x128xf32> to vector<128xf32>
    %257 = vector.shape_cast %256 : vector<128xf32> to vector<1x128xf32>
    %258 = vector.broadcast %257 : vector<1x128xf32> to vector<16x128xf32>
    %259 = arith.mulf %254, %258 : vector<16x128xf32>
    %c0_68 = arith.constant 0 : index
    %c0_69 = arith.constant 0 : index
    %260 = vector.load %arg20[%c0_68, %c0_69] : memref<1x128xf32, #tpu.memory_space<vmem>>, vector<1x128xf32>
    %261 = vector.shape_cast %260 : vector<1x128xf32> to vector<128xf32>
    %262 = vector.shape_cast %261 : vector<128xf32> to vector<1x128xf32>
    %263 = vector.broadcast %262 : vector<1x128xf32> to vector<16x128xf32>
    %264 = arith.addf %259, %263 : vector<16x128xf32>
    %c0_70 = arith.constant 0 : index
    %c0_71 = arith.constant 0 : index
    %265 = vector.load %arg21[%c0_70, %c0_71] : memref<16x128xf32, #tpu.memory_space<vmem>>, vector<16x128xf32>
    tpu.vector_store %arg21[%c0_70, %c0_71], %264 {strides = array<i32>} : memref<16x128xf32, #tpu.memory_space<vmem>>, vector<16x128xf32>,
    return
  }
  func.func @transform_0(%arg0: i32) -> (i32, i32) {
    %c0_i32 = arith.constant 0 : i32
    %c0_i32_0 = arith.constant 0 : i32
    return %c0_i32, %arg0 : i32, i32
  }
  func.func @transform_1(%arg0: i32) -> (i32, i32) {
    %c0_i32 = arith.constant 0 : i32
    %c0_i32_0 = arith.constant 0 : i32
    return %c0_i32, %arg0 : i32, i32
  }
  func.func @transform_2(%arg0: i32) -> (i32, i32) {
    %c0_i32 = arith.constant 0 : i32
    %c0_i32_0 = arith.constant 0 : i32
    %c0_i32_1 = arith.constant 0 : i32
    return %c0_i32, %c0_i32_0 : i32, i32
  }
  func.func @transform_3(%arg0: i32) -> (i32, i32) {
    %c0_i32 = arith.constant 0 : i32
    %c0_i32_0 = arith.constant 0 : i32
    %c0_i32_1 = arith.constant 0 : i32
    return %c0_i32, %c0_i32_0 : i32, i32
  }
  func.func @transform_4(%arg0: i32) -> (i32, i32) {
    %c0_i32 = arith.constant 0 : i32
    %c0_i32_0 = arith.constant 0 : i32
    %c0_i32_1 = arith.constant 0 : i32
    return %c0_i32, %c0_i32_0 : i32, i32
  }
  func.func @transform_5(%arg0: i32) -> (i32, i32) {
    %c0_i32 = arith.constant 0 : i32
    %c0_i32_0 = arith.constant 0 : i32
    %c0_i32_1 = arith.constant 0 : i32
    return %c0_i32, %c0_i32_0 : i32, i32
  }
  func.func @transform_6(%arg0: i32) -> (i32, i32) {
    %c0_i32 = arith.constant 0 : i32
    %c0_i32_0 = arith.constant 0 : i32
    %c0_i32_1 = arith.constant 0 : i32
    return %c0_i32, %c0_i32_0 : i32, i32
  }
  func.func @transform_7(%arg0: i32) -> (i32, i32) {
    %c0_i32 = arith.constant 0 : i32
    %c0_i32_0 = arith.constant 0 : i32
    %c0_i32_1 = arith.constant 0 : i32
    return %c0_i32, %c0_i32_0 : i32, i32
  }
  func.func @transform_8(%arg0: i32) -> (i32, i32) {
    %c0_i32 = arith.constant 0 : i32
    %c0_i32_0 = arith.constant 0 : i32
    %c0_i32_1 = arith.constant 0 : i32
    return %c0_i32, %c0_i32_0 : i32, i32
  }
  func.func @transform_9(%arg0: i32) -> (i32, i32) {
    %c0_i32 = arith.constant 0 : i32
    %c0_i32_0 = arith.constant 0 : i32
    %c0_i32_1 = arith.constant 0 : i32
    return %c0_i32, %c0_i32_0 : i32, i32
  }
  func.func @transform_10(%arg0: i32) -> (i32, i32) {
    %c0_i32 = arith.constant 0 : i32
    %c0_i32_0 = arith.constant 0 : i32
    %c0_i32_1 = arith.constant 0 : i32
    return %c0_i32, %c0_i32_0 : i32, i32
  }
  func.func @transform_11(%arg0: i32) -> (i32, i32) {
    %c0_i32 = arith.constant 0 : i32
    %c0_i32_0 = arith.constant 0 : i32
    %c0_i32_1 = arith.constant 0 : i32
    return %c0_i32, %c0_i32_0 : i32, i32
  }
  func.func @transform_12(%arg0: i32) -> (i32, i32) {
    %c0_i32 = arith.constant 0 : i32
    %c0_i32_0 = arith.constant 0 : i32
    %c0_i32_1 = arith.constant 0 : i32
    return %c0_i32, %c0_i32_0 : i32, i32
  }
  func.func @transform_13(%arg0: i32) -> (i32, i32) {
    %c0_i32 = arith.constant 0 : i32
    %c0_i32_0 = arith.constant 0 : i32
    %c0_i32_1 = arith.constant 0 : i32
    return %c0_i32, %c0_i32_0 : i32, i32
  }
  func.func @transform_14(%arg0: i32) -> (i32, i32) {
    %c0_i32 = arith.constant 0 : i32
    %c0_i32_0 = arith.constant 0 : i32
    %c0_i32_1 = arith.constant 0 : i32
    return %c0_i32, %c0_i32_0 : i32, i32
  }
  func.func @transform_15(%arg0: i32) -> (i32, i32) {
    %c0_i32 = arith.constant 0 : i32
    %c0_i32_0 = arith.constant 0 : i32
    %c0_i32_1 = arith.constant 0 : i32
    return %c0_i32, %c0_i32_0 : i32, i32
  }
  func.func @transform_16(%arg0: i32) -> (i32, i32) {
    %c0_i32 = arith.constant 0 : i32
    %c0_i32_0 = arith.constant 0 : i32
    %c0_i32_1 = arith.constant 0 : i32
    return %c0_i32, %c0_i32_0 : i32, i32
  }
  func.func @transform_17(%arg0: i32) -> (i32, i32) {
    %c0_i32 = arith.constant 0 : i32
    %c0_i32_0 = arith.constant 0 : i32
    %c0_i32_1 = arith.constant 0 : i32
    return %c0_i32, %c0_i32_0 : i32, i32
  }
  func.func @transform_18(%arg0: i32) -> (i32, i32) {
    %c0_i32 = arith.constant 0 : i32
    %c0_i32_0 = arith.constant 0 : i32
    %c0_i32_1 = arith.constant 0 : i32
    return %c0_i32, %c0_i32_0 : i32, i32
  }
  func.func @transform_19(%arg0: i32) -> (i32, i32) {
    %c0_i32 = arith.constant 0 : i32
    %c0_i32_0 = arith.constant 0 : i32
    %c0_i32_1 = arith.constant 0 : i32
    return %c0_i32, %c0_i32_0 : i32, i32
  }
  func.func @transform_20(%arg0: i32) -> (i32, i32) {
    %c0_i32 = arith.constant 0 : i32
    %c0_i32_0 = arith.constant 0 : i32
    return %c0_i32, %arg0 : i32, i32
  }
}

</mosaic_0001>

<bundles_post_ra>
// kernel: tpu_custom_call.1
= control target key start
LH: loop header
LB: loop body
LE: loop exit
PB: predicated region body
PF: predicated region fallthrough
CT: control target
= control target key end

     0   :  { %s5208_s0 = inlined_call_operand.hbm [shape: f32[16,256], index: 0, kind: input, shape index: {}]   ;;  %s5209_s1 = inlined_call_operand.hbm [shape: f32[16,256], index: 1, kind: input, shape index: {}]   ;;  %s5210_s2 = inlined_call_operand.hbm [shape: bf16[128,384], index: 2, kind: input, shape index: {}]   ;;  %s5211_s3 = inlined_call_operand.vmem [shape: f32[1,384], index: 3, kind: input, shape index: {}]   ;;  %s5212_s4 = inlined_call_operand.hbm [shape: bf16[128,128], index: 4, kind: input, shape index: {}]   ;;  %s5213_s5 = inlined_call_operand.vmem [shape: f32[1,128], index: 5, kind: input, shape index: {}]   ;;  %s5214_s6 = inlined_call_operand.hbm [shape: bf16[128,384], index: 6, kind: input, shape index: {}]   ;;  %s5215_s7 = inlined_call_operand.vmem [shape: f32[1,384], index: 7, kind: input, shape index: {}]   ;;  %s5216_s8 = inlined_call_operand.hbm [shape: bf16[128,128], index: 8, kind: input, shape index: {}]   ;;  %s5217_s9 = inlined_call_operand.vmem [shape: f32[1,128], index: 9, kind: input, shape index: {}]   ;;  %s5218_s10 = inlined_call_operand.hbm [shape: bf16[128,256], index: 10, kind: input, shape index: {}]   ;;  %s5219_s11 = inlined_call_operand.vmem [shape: f32[1,256], index: 11, kind: input, shape index: {}]   ;;  %s5220_s12 = inlined_call_operand.hbm [shape: bf16[256,128], index: 12, kind: input, shape index: {}]   ;;  %s5221_s13 = inlined_call_operand.vmem [shape: f32[1,128], index: 13, kind: input, shape index: {}]   ;;  %s5222_s14 = inlined_call_operand.vmem [shape: f32[1,128], index: 14, kind: input, shape index: {}]   ;;  %s5223_s15 = inlined_call_operand.vmem [shape: f32[1,128], index: 15, kind: input, shape index: {}]   ;;  %s5224_s16 = inlined_call_operand.vmem [shape: f32[1,128], index: 16, kind: input, shape index: {}]   ;;  %s5225_s17 = inlined_call_operand.vmem [shape: f32[1,128], index: 17, kind: input, shape index: {}]   ;;  %s5226_s18 = inlined_call_operand.vmem [shape: f32[1,128], index: 18, kind: input, shape index: {}]   ;;  %s5227_s19 = inlined_call_operand.vmem [shape: f32[1,128], index: 19, kind: input, shape index: {}]   ;;  %s5228_s20 = inlined_call_operand.hbm [shape: f32[16,256], index: 20, kind: output, shape index: {}]  }
   0x1   :  { %5249 = sst [smem:[#allocation30_spill]] %s5208_s0 }
   0x2   :  { %5250 = sst [smem:[#allocation31_spill]] %s5209_s1 }
   0x3   :  { %5251 = sst [smem:[#allocation32_spill]] %s5210_s2 }
   0x4   :  { %5252 = sst [smem:[#allocation33_spill]] %s5211_s3 }
   0x5   :  { %5253 = sst [smem:[#allocation34_spill]] %s5212_s4 }
   0x6   :  { %5254 = sst [smem:[#allocation35_spill]] %s5214_s6 }
   0x7   :  { %5255 = sst [smem:[#allocation36_spill]] %s5216_s8 }
   0x8   :  { %5256 = sst [smem:[#allocation37_spill]] %s5218_s10 }
   0x9   :  { %5257 = sst [smem:[#allocation38_spill]] %s5219_s11 }
   0xa   :  { %5258 = sst [smem:[#allocation39_spill]] %s5220_s12 }
   0xb   :  { %5259 = sst [smem:[#allocation40_spill]] %s5221_s13 }
   0xc   :  { %5260 = sst [smem:[#allocation41_spill]] %s5225_s17 }
   0xd   :  { %5261 = sst [smem:[#allocation42_spill]] %s5226_s18 }
   0xe   :  { %5262 = sst [smem:[#allocation43_spill]] %s5227_s19 }
   0xf   :  { %5263 = sst [smem:[#allocation44_spill]] %s5228_s20 }
  0x10   :  { %25 = vsyncpa [#allocation3], 0 }
  0x11   :  { %27 = vsyncpa [#allocation3 + $0x1], 0 }
  0x12   :  { %28 = vsyncpa [#allocation6], 0 }
  0x13   :  { %30 = vsyncpa [#allocation6 + $0x1], 0 }
  0x14   :  { %31 = vsyncpa [#allocation9], 0 }
  0x15   :  { %32 = vsyncpa [#allocation12], 0 }
  0x16   :  { %33 = vsyncpa [#allocation15], 0 }
  0x17   :  { %34 = vsyncpa [#allocation4], 0 }
  0x18   :  { %36 = vsyncpa [#allocation4 + $0x1], 0  ;;  %s4584_s1 = smov 0   ;;  %s4586_s22 = smov 0  }
  0x19   :  { %s4588_s23 = smov 0   ;;  %s4590_s24 = smov 0  }
  0x1a LB: > { %5264 = sst [smem:[#allocation24_spill]] %s4440_s1  ;;  %s4454_s2 = smov [#allocation7]   ;;  %s4452_s24 = sphi %s4590_s24, %s5313_s24   ;;  %s4448_s23 = sphi %s4588_s23, %s5315_s23   ;;  %s4444_s22 = sphi %s4586_s22, %s5317_s22   ;;  %s4440_s1 = sphi %s4584_s1, %s5316_s1  }
  0x1b   : > { %5265 = sst [smem:[#allocation25_spill]] %s4448_s23  ;;  %s515_s25 = sshll.u32 %s4454_s2, 4  ;;  %s516_s25 = int_to_ptr.vmem [resolvable:$true] %s515_s25 }
  0x1c   : > { %s4605_s3 = sadd.s32 4294967295, %s4452_s24   ;;  %p3299_p0 = scmp.ge.s32.totalorder %s4452_s24, 1 }
  0x1d   : > { %p5245_p1 = scmp.eq.s32.totalorder %s4605_s3, 0  ;;  %p503_p2 = scmp.lt.s32.totalorder %s4452_s24, 3 }
  0x1e   : > { %s4455_s27 = smov [#allocation8]   ;;  %s4456_s29 = smov [#allocation11]  }
  0x1f   : > { %p4610_p3 = pnand %p3299_p0, %p503_p2  ;;  %s531_s28 = sshll.u32 %s4455_s27, 4  ;;  %s4623_s28 = int_to_ptr.vmem [resolvable:$true] %s531_s28 }
  0x20   : > { %s4625_s30 = sshll.u32 %s4456_s29, 4  ;;  %s4167_s21 = scalar_lea.vmem %s516_s25, 3072  ;;  %s564_s30 = int_to_ptr.vmem [resolvable:$true] %s4625_s30 }
  0x21   : > { %p3742_p5 = pneg %p4610_p3  ;;  %p4168_p8 = scmp.ne.s32.totalorder %s516_s25, %s4167_s21 }
  0x22   : > { %p4175_p11 = scmp.lt.s32.totalorder %s516_s25, %s516_s25  ;;  %p4176_p12 = scmp.lt.s32.totalorder %s4167_s21, %s4167_s21 }
  0x23   : > { %p4619_p6 = pnand %p3742_p5, %p5245_p1 }
  0x24   : > { %p4177_p13 = por %p4176_p12, %p4175_p11 }
  0x25   : > { %p4629_p7 = pneg %p4619_p6 }
  0x27   : > { %p4170_p9 = pnand %p4168_p8, %p4629_p7 }
  0x29   : > { %p4171_p10 = pneg %p4170_p9 }
  0x2b   : > { %p4178_p0 = pnand %p4177_p13, %p4171_p10 }
  0x2d   : > { %4181 = shalt.err (!%p4178_p0)
}
  0x2e   : > { %s5232_s2 = smov 192   ;;  %s5233_s27 = smov 12  }
  0x2f   : > { %s5269_s19 = sld [smem:[#allocation32_spill]]  ;;  %s4193_s18 = scalar_lea.vmem %s4623_s28, 1024 }
  0x30   : > { %p4194_p2 = scmp.ne.s32.totalorder %s4623_s28, %s4193_s18  ;;  %p4201_p9 = scmp.lt.s32.totalorder %s4623_s28, %s4623_s28 }
  0x31   : > { %p4202_p10 = scmp.lt.s32.totalorder %s4193_s18, %s4193_s18 }
  0x32   : > { %p4196_p5 = pnand %p4194_p2, %p4629_p7 }
  0x33   : > { %p4203_p11 = por %p4202_p10, %p4201_p9 }
  0x34   : > { %p4197_p8 = pneg %p4196_p5 }
  0x35   : > { %3745 = dma.hbm_to_vmem [thread:$0]  (!%p4619_p6), %s5269_s19, 3072, %s516_s25, [#allocation6], %s5232_s2, %s5232_s2, %s5233_s27  }
  0x36   : > { %p4204_p12 = pnand %p4203_p11, %p4197_p8 }
  0x38   : > { %4207 = shalt.err (!%p4204_p12)
}
  0x39   : > { %s4459_s21 = smov 64   ;;  %s4460_s13 = smov 4  }
  0x3a   : > { %s5270_s25 = sld [smem:[#allocation34_spill]]  ;;  %s4219_s29 = scalar_lea.vmem %s564_s30, 1024 }
  0x3b   : > { %p4220_p13 = scmp.ne.s32.totalorder %s564_s30, %s4219_s29  ;;  %p4227_p5 = scmp.lt.s32.totalorder %s564_s30, %s564_s30 }
  0x3c   : > { %p4228_p8 = scmp.lt.s32.totalorder %s4219_s29, %s4219_s29 }
  0x3d   : > { %p4222_p0 = pnand %p4220_p13, %p4629_p7 }
  0x3e   : > { %p4229_p9 = por %p4228_p8, %p4227_p5 }
  0x3f   : > { %p4223_p2 = pneg %p4222_p0 }
  0x40   : > { %3748 = dma.hbm_to_vmem [thread:$0]  (!%p4619_p6), %s5270_s25, 1024, %s4623_s28, [#allocation9], %s4459_s21, %s4459_s21, %s4460_s13  }
  0x41   : > { %p4230_p10 = pnand %p4229_p9, %p4223_p2 }
  0x43   : > { %4233 = shalt.err (!%p4230_p10)
}
  0x44   : > { %s5271_s8 = sld [smem:[#allocation36_spill]]  ;;  %s4461_s28 = smov [#allocation10]  }
  0x45   : > { %s547_s19 = sshll.u32 %s4461_s28, 4  ;;  %s4462_s20 = smov [#allocation13]   ;;  %s548_s19 = int_to_ptr.vmem [resolvable:$true] %s547_s19 }
  0x46   : > { %s579_s25 = sshll.u32 %s4462_s20, 4  ;;  %s4245_s27 = scalar_lea.vmem %s548_s19, 3072  ;;  %s580_s25 = int_to_ptr.vmem [resolvable:$true] %s579_s25 }
  0x47   : > { %p4246_p11 = scmp.ne.s32.totalorder %s548_s19, %s4245_s27  ;;  %p4253_p0 = scmp.lt.s32.totalorder %s548_s19, %s548_s19 }
  0x48   : > { %p4254_p2 = scmp.lt.s32.totalorder %s4245_s27, %s4245_s27 }
  0x49   : > { %p4248_p12 = pnand %p4246_p11, %p4629_p7 }
  0x4a   : > { %3754 = dma.hbm_to_vmem [thread:$0]  (!%p4619_p6), %s5271_s8, 1024, %s564_s30, [#allocation12], %s4459_s21, %s4459_s21, %s4460_s13  }
  0x4b   : > { %p4249_p13 = pneg %p4248_p12  ;;  %p4255_p5 = por %p4254_p2, %p4253_p0 }
  0x4d   : > { %p4256_p8 = pnand %p4255_p5, %p4249_p13 }
  0x4f   : > { %4259 = shalt.err (!%p4256_p8)
}
  0x50   : > { %s5272_s2 = smov 12   ;;  %s5273_s29 = smov 192  }
  0x51   : > { %s5274_s6 = sld [smem:[#allocation35_spill]]  ;;  %s4271_s28 = scalar_lea.vmem %s580_s25, 2048 }
  0x52   : > { %p4272_p9 = scmp.ne.s32.totalorder %s580_s25, %s4271_s28  ;;  %p4279_p12 = scmp.lt.s32.totalorder %s580_s25, %s580_s25 }
  0x53   : > { %p4280_p0 = scmp.lt.s32.totalorder %s4271_s28, %s4271_s28 }
  0x54   : > { %p4274_p10 = pnand %p4272_p9, %p4629_p7 }
  0x55   : > { %p4281_p13 = por %p4280_p0, %p4279_p12 }
  0x56   : > { %p4275_p11 = pneg %p4274_p10 }
  0x57   : > { %3751 = dma.hbm_to_vmem [thread:$0]  (!%p4619_p6), %s5274_s6, 3072, %s548_s19, [#allocation9], %s5273_s29, %s5273_s29, %s5272_s2  }
  0x58   : > { %p4282_p2 = pnand %p4281_p13, %p4275_p11 }
  0x5a   : > { %4285 = shalt.err (!%p4282_p2)
}
  0x5b   : > { %s5234_s27 = smov 128   ;;  %s5236_s20 = smov 8  }
  0x5c   : > { %s5275_s10 = sld [smem:[#allocation37_spill]]  ;;  %s4465_s29 = smov [#allocation14]  }
  0x5d   : > { %s595_s30 = sshll.u32 %s4465_s29, 4  ;;  %s596_s30 = int_to_ptr.vmem [resolvable:$true] %s595_s30 }
  0x5e   : > { %s4297_s18 = scalar_lea.vmem %s596_s30, 2048  ;;  %p4305_p10 = scmp.lt.s32.totalorder %s596_s30, %s596_s30 }
  0x5f   : > { %p4298_p5 = scmp.ne.s32.totalorder %s596_s30, %s4297_s18  ;;  %p4306_p11 = scmp.lt.s32.totalorder %s4297_s18, %s4297_s18 }
  0x61   : > { %p4300_p8 = pnand %p4298_p5, %p4629_p7  ;;  %p4307_p12 = por %p4306_p11, %p4305_p10 }
  0x62   : > { %3757 = dma.hbm_to_vmem [thread:$0]  (!%p4619_p6), %s5275_s10, 2048, %s580_s25, [#allocation12], %s5234_s27, %s5234_s27, %s5236_s20  }
  0x63   : > { %p4301_p9 = pneg %p4300_p8 }
  0x65   : > { %p4308_p0 = pnand %p4307_p12, %p4301_p9 }
  0x67   : > { %4311 = shalt.err (!%p4308_p0)
}
  0x68   : > { %s5276_s12 = sld [smem:[#allocation39_spill]]  ;;  %s3298_s4 = sadd.s32 4294967294, %s4452_s24  }
  0x69   : > { %s4701_s0 = sadd.s32 1, %s4452_s24   ;;  %s49_s2 = sadd.s32 1, %s4448_s23 }
  0x6a   : > { %5277 = sst [smem:[#allocation26_spill]] %s4701_s0  ;;  %s46_s19 = ssub.s32 %s4452_s24, %s4701_s0 }
  0x6b   : > { %p47_p7 = scmp.eq.s32.totalorder %s46_s19, 0  ;;  %p56_p13 = scmp.ne.s32.totalorder %s4448_s23, %s4444_s22 }
  0x6c   : > { %p57_p2 = scmp.eq.s32.totalorder %s4452_s24, 0  ;;  %p62_p5 = scmp.ne.s32.totalorder %s4444_s22, %s4440_s1 }
  0x6d   : > { %s4712_s29 = scalar_select %p47_p7, %s4448_s23, %s49_s2  }
  0x6e   : > { %3760 = dma.hbm_to_vmem [thread:$0]  (!%p4619_p6), %s5276_s12, 2048, %s596_s30, [#allocation15], %s4459_s21, %s4459_s21, %s4460_s13  }
  0x6f   : > { %5278 = sst [smem:[#allocation27_spill]] %s4712_s29  ;;  %p4714_p8 = por %p57_p2, %p56_p13 }
  0x70   : > { %p4720_p6 = por %p5245_p1, %p62_p5  ;;  %p490_p9 = scmp.eq.s32.totalorder %s4605_s3, 1 }
  0x71   : > { %p496_p10 = scmp.eq.s32.totalorder %s3298_s4, 1  ;;  %p3778_p11 = scmp.lt.s32.totalorder %s4452_s24, 2 }
  0x72   : > { %s5280_s13 = scalar_select %p4720_p6, 1, 0 }
  0x73   : > { %s630_s21 = sand.u32 1, %s4448_s23   ;;  %p4727_p12 = por %p490_p9, %p56_p13 }
  0x74   : > { %p4731_p0 = por %p496_p10, %p62_p5  ;;  %s4735_s25 = sshll.u32 %s630_s21, 4 }
  0x75   : > { %s5281_s30 = scalar_select %p4727_p12, 1, 0 }
  0x76   : > { %s5283_s28 = scalar_select %p4731_p0, 1, 0 }
  0x77   : > { %5282 = sst [smem:[#allocation28_spill]] %s5281_s30  ;;  %s3308_s19 = sshll.u32 %s4452_s24, 7 }
  0x78   : > { %5284 = sst [smem:[#allocation29_spill]] %s5283_s28  ;;  %s634_s4 = scalar_lea.vmem [#allocation2], %s4735_s25 }
  0x79   : > { %s5285_s20 = sld [smem:[#allocation30_spill]]  ;;  %s640_s8 = sshll.u32 %s634_s4, 4  ;;  %s4744_s8 = int_to_ptr.vmem [resolvable:$true] %s640_s8 }
  0x7a   : > { %p4748_p7 = pnand %p3778_p11, %p4714_p8  ;;  %s5287_s23 = sld [smem:[#allocation31_spill]] }
  0x7b   : > { %s4757_s2 = scalar_lea.sflag [#allocation3], %s630_s21 }
  0x7c   : > { %p4314_p2 = pneg %p4748_p7 }
  0x7f   : > { %s4741_s6 = scalar_lea.hbm %s5285_s20, %s3308_s19  ;;  %s4317_s1 = scalar_lea.hbm %s5285_s20, 512 }
  0x80   : > { %s5288_s0 = smov %s5287_s23  ;;  %s4755_s27 = scalar_lea.hbm %s5287_s23, %s3308_s19 }
  0x81   : > { %s4312_s28 = scalar_lea.hbm %s4741_s6, 256  ;;  %p4318_p9 = scmp.lt.s32.totalorder %s4741_s6, %s5285_s20 }
  0x82   : > { %p4313_p13 = scmp.ne.s32.totalorder %s4741_s6, %s4312_s28  ;;  %p4319_p10 = scmp.lt.s32.totalorder %s4317_s1, %s4312_s28 }
  0x84   : > { %p4315_p5 = pnand %p4314_p2, %p4313_p13  ;;  %p4320_p11 = por %p4319_p10, %p4318_p9 }
  0x86   : > { %p4316_p8 = pneg %p4315_p5 }
  0x88   : > { %p4321_p4 = pnand %p4320_p11, %p4316_p8 }
  0x8a   : > { %4324 = shalt.err (!%p4321_p4)
}
  0x8b   : > { %s4325_s23 = scalar_lea.vmem %s4744_s8, 256  ;;  %s4466_s29 = smov [#allocation2]  }
  0x8c   : > { %p4326_p1 = scmp.ne.s32.totalorder %s4744_s8, %s4325_s23  ;;  %s4330_s21 = sshll.u32 %s4466_s29, 4  ;;  %s4331_s21 = int_to_ptr.vmem [resolvable:$false] %s4330_s21 }
  0x8d   : > { %s4332_s19 = scalar_lea.vmem %s4331_s21, 512  ;;  %p4333_p0 = scmp.lt.s32.totalorder %s4744_s8, %s4331_s21 }
  0x8e   : > { %p4328_p13 = pnand %p4326_p1, %p4314_p2  ;;  %p4334_p12 = scmp.lt.s32.totalorder %s4332_s19, %s4325_s23 }
  0x90   : > { %p4329_p5 = pneg %p4328_p13  ;;  %p4335_p6 = por %p4334_p12, %p4333_p0 }
  0x92   : > { %p4336_p9 = pnand %p4335_p6, %p4329_p5 }
  0x94   : > { %4339 = shalt.err (!%p4336_p9)
}
  0x95   : > { %s4467_s1 = smov 256   ;;  %s5289_s30 = smov 8  }
  0x96   : > { %s5290_s28 = smov 128   ;;  %s654_s18 = scalar_lea.vmem [#allocation5], %s4735_s25 }
  0x97   : > { %3764 = dma.hbm_to_vmem [thread:$0]  (!%p4748_p7), %s4741_s6, 256, %s4744_s8, %s4757_s2, %s4467_s1, %s5290_s28, %s5289_s30  }
  0x98   : > { %s660_s4 = sshll.u32 %s654_s18, 4  ;;  %s650_s12 = sand.u32 1, %s4452_s24   ;;  %s4789_s4 = int_to_ptr.vmem [resolvable:$true] %s660_s4 }
  0x99   : > { %s651_s23 = scalar_lea.sflag [#allocation6], %s650_s12  ;;  %s4340_s29 = scalar_lea.hbm %s4755_s27, 256 }
  0x9a   : > { %p4341_p1 = scmp.ne.s32.totalorder %s4755_s27, %s4340_s29  ;;  %s4345_s20 = scalar_lea.hbm %s5288_s0, 512 }
  0x9b   : > { %p4346_p12 = scmp.lt.s32.totalorder %s4755_s27, %s5288_s0  ;;  %p4347_p0 = scmp.lt.s32.totalorder %s4345_s20, %s4340_s29 }
  0x9c   : > { %p4343_p4 = pnand %p4341_p1, %p4314_p2 }
  0x9d   : > { %p4348_p8 = por %p4347_p0, %p4346_p12 }
  0x9e   : > { %p4344_p6 = pneg %p4343_p4 }
  0xa0   : > { %p4349_p10 = pnand %p4348_p8, %p4344_p6 }
  0xa2   : > { %4352 = shalt.err (!%p4349_p10)
}
  0xa3   : > { %s4353_s6 = scalar_lea.vmem %s4789_s4, 256  ;;  %s4468_s8 = smov [#allocation5]  }
  0xa4   : > { %p4354_p11 = scmp.ne.s32.totalorder %s4789_s4, %s4353_s6  ;;  %s4358_s25 = sshll.u32 %s4468_s8, 4  ;;  %s4359_s25 = int_to_ptr.vmem [resolvable:$false] %s4358_s25 }
  0xa5   : > { %s4360_s2 = scalar_lea.vmem %s4359_s25, 512  ;;  %p4361_p9 = scmp.lt.s32.totalorder %s4789_s4, %s4359_s25 }
  0xa6   : > { %p4356_p13 = pnand %p4354_p11, %p4314_p2  ;;  %p4362_p1 = scmp.lt.s32.totalorder %s4360_s2, %s4353_s6 }
  0xa8   : > { %p4357_p5 = pneg %p4356_p13  ;;  %p4363_p4 = por %p4362_p1, %p4361_p9 }
  0xaa   : > { %p4364_p12 = pnand %p4363_p4, %p4357_p5 }
  0xac   : > { %4367 = shalt.err (!%p4364_p12)
}
  0xad   : > { %3767 = dma.hbm_to_vmem [thread:$0]  (!%p4748_p7), %s4755_s27, 256, %s4789_s4, %s651_s23, %s4467_s1, %s5290_s28, %s5289_s30  }
  0xae   : > { %672 = sbr.rel (%p4610_p3) target bundleno = 4323 (0x10e3), region = 100  ;;  %s4819_s11 = sand.u32 (!%p4610_p3), 1, %s4444_s22  }
  0xaf   : > { %s4822_s17 = sshll.u32 (!%p4610_p3), %s4819_s11, 4  ;;  %s675_s20 = scalar_lea.sflag (!%p4610_p3), [#allocation3], %s4819_s11 }
  0xb0   : > { %s678_s10 = scalar_lea.vmem (!%p4610_p3), [#allocation2], %s4822_s17  ;;  %p5291_p2 = scmp.ne.s32.totalorder (!%p4610_p3), %s5280_s13, 0 }
  0xb3   : > { %4411 = dma.done.wait (%p5291_p2), %s675_s20, 256  }
  0xb4   : > { %4413 = vsyncadd (%p5291_p2), %s675_s20, 4294967040  ;;  %s683_s26 = sand.u32 1, %s4605_s3   ;;  %s687_s1 = scalar_lea.vmem [#allocation5], %s4822_s17 }
  0xb5   : > { %s684_s27 = scalar_lea.sflag [#allocation6], %s683_s26 }
  0xb6   : > { %4415 = dma.done.wait (%p5291_p2), %s684_s27, 256  }
  0xb7   : > { %4417 = vsyncadd (%p5291_p2), %s684_s27, 4294967040  ;;  %p5292_p3 = scmp.eq.s32.totalorder %s4605_s3, 0 }
  0xb9   : > { %4419 = dma.done.wait (%p5292_p3), [#allocation6], 3072   ;;  %p5293_p7 = pmov %p5292_p3 }
  0xba   : > { %p5294_p6 = pmov %p5292_p3 }
  0xbb   : > { %4421 = vsyncadd (%p5293_p7), [#allocation6], 4294964224 }
  0xbc   : > { %4423 = dma.done.wait (%p5294_p6), [#allocation9], 4096   ;;  %p5295_p0 = pmov %p5292_p3 }
  0xbe   : > { %4425 = vsyncadd (%p5295_p0), [#allocation9], 4294963200  ;;  %p5296_p8 = pmov %p5295_p0 }
  0xbf   : > { %p5297_p10 = pmov %p5295_p0 }
  0xc0   : > { %4427 = dma.done.wait (%p5296_p8), [#allocation12], 3072  }
  0xc1   : > { %4429 = vsyncadd (%p5297_p10), [#allocation12], 4294964224  ;;  %p5298_p11 = pmov %p5295_p0 }
  0xc2   : > { %p5299_p13 = pmov %p5295_p0 }
  0xc3   : > { %4431 = dma.done.wait (%p5298_p11), [#allocation15], 2048  }
  0xc4   : > { %4433 = vsyncadd (%p5299_p13), [#allocation15], 4294965248  ;;  %v4469_v0 = vmov 0   ;;  %v4470_v1 = vmov 0.0   ;;  %v3960_v2 = vld [vmem:[#allocation7 + $0xac] ss:$12 sps:$4 sm:$0xff]   ;;  %v778_v29 = vlaneseq }
  0xc5   : > { %995 = vmatprep.mubr.bf16.mxu0 %v4469_v0  ;;  %3536 = vmatprep.subr.bf16.mxu1 %v4470_v1  ;;  %v3962_v3 = vld [vmem:[#allocation7 + $0xa8] ss:$12 sps:$4 sm:$0xff]   ;;  %v3965_v5 = vld [vmem:[#allocation7 + $0x90] ss:$12 sps:$4 sm:$0xff]   ;;  %v3968_v7 = vld [vmem:[#allocation7 + $0x78] ss:$12 sps:$4 sm:$0xff]  }
  0xc6   : > { %963 = vmatprep.subr.bf16.mxu0 %v3960_v2  ;;  %v3963_v4 = vld [vmem:[#allocation7 + $0x94] ss:$12 sps:$4 sm:$0xff]   ;;  %v3966_v6 = vld [vmem:[#allocation7 + $0x7c] ss:$12 sps:$4 sm:$0xff]   ;;  %v3969_v8 = vld [vmem:[#allocation7 + $0x64] ss:$12 sps:$4 sm:$0xff]  }
  0xc7   : > { %964 = vmatpush1.bf16.msra.mxu0 %v3962_v3  ;;  %v3971_v9 = vld [vmem:[#allocation7 + $0x60] ss:$12 sps:$4 sm:$0xff]   ;;  %v3984_v11 = vld [vmem:[#allocation7 + $0xb0] ss:$12 sps:$4 sm:$0xff]   ;;  %v3985_v12 = vld [vmem:[#allocation7 + $0x98] ss:$12 sps:$4 sm:$0xff]  }
  0xc8   : > { %965 = vmatprep.subr.bf16.mxu0 %v3963_v4  ;;  %v3972_v10 = vld [vmem:[#allocation7 + $0x4c] ss:$12 sps:$4 sm:$0xff]   ;;  %3537 = vmatpush3.bf16.msra.mxu1 %v3984_v11  ;;  %v3974_v13 = vld [vmem:[#allocation7 + $0x48] ss:$12 sps:$4 sm:$0xff]   ;;  %v3977_v16 = vld [vmem:[#allocation7 + $0x30] ss:$12 sps:$4 sm:$0xff]  }
  0xc9   : > { %3538 = vmatprep.subr.bf16.mxu1 %v4470_v1  ;;  %v3975_v14 = vld [vmem:[#allocation7 + $0x34] ss:$12 sps:$4 sm:$0xff]   ;;  %v3978_v17 = vld [vmem:[#allocation7 + $0x1c] ss:$12 sps:$4 sm:$0xff]   ;;  %v3980_v19 = vld [vmem:[#allocation7 + $0x18] ss:$12 sps:$4 sm:$0xff]  }
  0xca   : > { %v3986_v15 = vld [vmem:[#allocation7 + $0x80] ss:$12 sps:$4 sm:$0xff]   ;;  %v3987_v18 = vld [vmem:[#allocation7 + $0x68] ss:$12 sps:$4 sm:$0xff]   ;;  %v3981_v20 = vld [vmem:[#allocation7 + $0x4] ss:$12 sps:$4 sm:$0xff]  }
  0xcb   : > { %966 = vmatpush1.bf16.msra.mxu0 %v3965_v5  ;;  %v3988_v21 = vld [vmem:[#allocation7 + $0x50] ss:$12 sps:$4 sm:$0xff]   ;;  %v3983_v22 = vld [vmem:[#allocation7] ss:$12 sps:$4 sm:$0xff]   ;;  %v3989_v26 = vld [vmem:[#allocation7 + $0x38] ss:$12 sps:$4 sm:$0xff]  }
  0xcc   : > { %967 = vmatprep.subr.bf16.mxu0 %v3966_v6  ;;  %3539 = vmatpush3.bf16.msra.mxu1 %v3985_v12  ;;  %v4859_v23 = vld [vmem:[%s678_s10] sm:$0xff]  ;;  %v4863_v24 = vld [vmem:[%s678_s10 + $0x8] sm:$0xff]  ;;  %vm4471_vm0 = vmmov 0   ;;  %v4880_v30 = vshrl.u32 %v778_v29, 7  ;;  %s5300_s28 = sld [smem:[#allocation33_spill]]  ;;  %vm1119_vm1 = vcmask 261120  }
  0xcd   : > { %3540 = vmatprep.subr.bf16.mxu1 %v4470_v1  ;;  %v817_v25 = vpack.c.bf16 %v4863_v24, %v4859_v23  ;;  %v3990_v27 = vld [vmem:[#allocation7 + $0x20] ss:$12 sps:$4 sm:$0xff]   ;;  %v3991_v28 = vld [vmem:[#allocation7 + $0x8] ss:$12 sps:$4 sm:$0xff]   ;;  %3552 = vmatprep.mubr.msk.bf16.mxu1 %vm4471_vm0, %v4470_v1  ;;  %s4472_s18 = smov 64   ;;  %s4473_s4 = smov 96  }
  0xce   : > { %v4883_v31 = vsub.s32 1, %v4880_v30  ;;  %v4889_v35 = vsub.s32 0, %v4880_v30  ;;  %s4474_s12 = smov 32   ;;  %v830_v51 = vsub.s32 2, %v4880_v30  ;;  %vm1320_vm3 = vcmask 130048   ;;  %s5301_s30 = sld [smem:[#allocation41_spill]] }
  0xcf   : > { %968 = vmatpush1.bf16.msra.mxu0 %v3968_v7  ;;  %vm1615_vm5 = vcmask 523264   ;;  %vm1618_vm6 = vcmask 785408   ;;  %s5303_s29 = sld [smem:[#allocation40_spill]]  ;;  %s3443_s10 = sshll.u32 %s4605_s3, 7 }
  0xd0   : > { %969 = vmatprep.subr.bf16.mxu0 %v3969_v8  ;;  %3541 = vmatpush3.bf16.msra.mxu1 %v3986_v15  ;;  %s5304_s6 = sld [smem:[#allocation42_spill]]  ;;  %s772_s26 = scalar_lea.vmem [#allocation16], %s4822_s17 }
  0xd1   : > { %3542 = vmatprep.subr.bf16.mxu1 %v4470_v1  ;;  %s5305_s2 = sld [smem:[#allocation43_spill]]  ;;  %s3145_s27 = sshll.u32 %s772_s26, 4  ;;  %s5165_s27 = int_to_ptr.vmem [resolvable:$true] %s3145_s27 }
  0xd2   : > { %v818_v33 = vld [vmem:[%s5300_s28] sm:$0x7]  ;;  %s5306_s20 = sld [smem:[#allocation28_spill]]  ;;  %s4368_s3 = scalar_lea.vmem %s5165_s27, 256 }
  0xd3   : > { %970 = vmatpush1.bf16.msra.mxu0 %v3971_v9  ;;  %v827_v36 = vrot.slane %v818_v33, %v4883_v31  ;;  %v823_v39 = vrot.slane %v818_v33, %v4889_v35  ;;  %v831_v54 = vrot.slane %v818_v33, %v830_v51  ;;  %p4369_p5 = scmp.ne.s32.totalorder %s5165_s27, %s4368_s3  ;;  %s4475_s17 = smov [#allocation16]  }
  0xd4   : > { %971 = vmatprep.subr.bf16.mxu0 %v3972_v10  ;;  %3543 = vmatpush3.bf16.msra.mxu1 %v3987_v18 }
  0xd5   : > { %3544 = vmatprep.subr.bf16.mxu1 %v4470_v1 }
  0xd7   : > { %972 = vmatpush1.bf16.msra.mxu0 %v3974_v13 }
  0xd8   : > { %973 = vmatprep.subr.bf16.mxu0 %v3975_v14  ;;  %3545 = vmatpush3.bf16.msra.mxu1 %v3988_v21  ;;  %p5308_p9 = scmp.ne.s32.totalorder %s5306_s20, 0 }
  0xd9   : > { %3546 = vmatprep.subr.bf16.mxu1 %v4470_v1 }
  0xda   : > { %p4370_p1 = pnand %p4369_p5, %p5308_p9 }
  0xdb   : > { %974 = vmatpush1.bf16.msra.mxu0 %v3977_v16 }
  0xdc   : > { %975 = vmatprep.subr.bf16.mxu0 %v3978_v17  ;;  %3547 = vmatpush3.bf16.msra.mxu1 %v3989_v26  ;;  %v780_v26 = vadd.s32 8, %v4880_v30  ;;  %p4371_p4 = pneg %p4370_p1 }
  0xdd   : > { %3548 = vmatprep.subr.bf16.mxu1 %v4470_v1 }
  0xdf   : > { %976 = vmatpush1.bf16.msra.mxu0 %v3980_v19 }
  0xe0   : > { %977 = vmatprep.subr.bf16.mxu0 %v3981_v20  ;;  %3549 = vmatpush3.bf16.msra.mxu1 %v3990_v27 }
  0xe1   : > { %3550 = vmatprep.subr.bf16.mxu1 %v4470_v1 }
  0xe3   : > { %978 = vmatpush1.bf16.msra.mxu0 %v3983_v22 }
  0xe4   : > { %3580 = vmatprep.subr.bf16.mxu0 %v4470_v1  ;;  %3551 = vmatpush3.bf16.msra.mxu1 %v3991_v28 }
  0xe5   : > { %3556 = vmatprep.subr.bf16.mxu1 %v4470_v1 }
  0xe6   : > { %996 = vmatmul.mubr.bf16.vlgmr.msra.gmra.mxu0 %v817_v25 }
  0xe7   : > { %3582 = vmatprep.mubr.msk.bf16.mxu0 %vm4471_vm0, %v4470_v1  ;;  %3553 = vmatmul.mubr.bf16.vlgmr.msra.gmra.mxu1 %v817_v25  ;;  %v782_v25 = vand.u32 127, %v778_v29 }
  0xe8   : > { %3558 = vmatprep.mubr.msk.bf16.mxu1 %vm4471_vm0, %v4470_v1 }
  0xe9   : > { %vm783_vm2 = vcmp.gt.s32.totalorder %v782_v25, %v4880_v30  ;;  %vm784_vm4 = vcmp.gt.s32.totalorder %v782_v25, %v780_v26 }
 0x1a6   : > { %v997_v32 = vpop.f32.mrf.mxu0 }
 0x1a7   : > { %v998_v45 = vadd.f32 %v997_v32, %v823_v39  ;;  %v1040_v49 = vpop.f32.mrf.mxu1 }
 0x1a8   : > { %v999_v34 = vpop.f32.mrf.mxu0  ;;  %v4905_v55 = vadd.f32 %v1040_v49, %v831_v54 }
 0x1a9   : > { %v1000_v40 = vadd.f32 %v999_v34, %v827_v36  ;;  %v3554_v50 = vpop.f32.mrf.mxu1 }
 0x1aa   : > { %v1001_v37 = vpop.f32.mrf.mxu0 }
 0x1ab   : > { %v1002_v42 = vadd.f32 %v1001_v37, %v823_v39  ;;  %v1043_v52 = vpop.f32.mrf.mxu1 }
 0x1ac   : > { %v1003_v38 = vpop.f32.mrf.mxu0  ;;  %v4907_v56 = vadd.f32 %v1043_v52, %v831_v54 }
 0x1ad   : > { %v1004_v41 = vadd.f32 %v1003_v38, %v827_v36  ;;  %v3855_v47 = vpack.i.bf16 %v1002_v42, %v998_v45  ;;  %v1067_v48 = vpack.c.bf16 %v1002_v42, %v998_v45  ;;  %v3555_v53 = vpop.f32.mrf.mxu1 }
 0x1ae   : > { %v1115_v57 = vpack.c.bf16 %v4907_v56, %v4905_v55 }
 0x1af   : > { %v3850_v43 = vpack.i.bf16 %v1004_v41, %v1000_v40  ;;  %v1091_v44 = vpack.c.bf16 %v1004_v41, %v1000_v40 }
 0x1b0   : > { %3581 = vmatpush3.bf16.msra.mxu0 %v1115_v57 }
 0x1b1   : > { %3851 = vrot.lane.b32.xlu1 %v3850_v43, %s4472_s18  ;;  %3841 = vrot.lane.b32.xlu0 %v3850_v43, %s4473_s4  ;;  %v1124_v46 = vsel %vm1119_vm1, %v1091_v44, 0 }
 0x1b2   : > { %3557 = vmatpush3.bf16.xpose.msra.mxu1 %v1124_v46  ;;  %3592 = vmatprep.subr.bf16.mxu0 %v4470_v1 }
 0x1b3   : > { %3562 = vmatprep.subr.bf16.mxu1 %v4470_v1 }
 0x1b5   : > { %3856 = vrot.lane.b32.xlu1 %v3855_v47, %s4472_s18  ;;  %3846 = vrot.lane.b32.xlu0 %v3855_v47, %s4473_s4 }
 0x1b9   : > { %3866 = vrot.lane.b32.xlu1 %v3855_v47, %s4474_s12  ;;  %3861 = vrot.lane.b32.xlu0 %v3850_v43, %s4474_s12 }
 0x1ba   : > { %3559 = vmatmul.mubr.msk.bf16.vlgmr.msra.gmra.mxu1 %vm1119_vm1, %v1067_v48 }
 0x1bb   : > { %3564 = vmatprep.mubr.msk.bf16.mxu1 %vm4471_vm0, %v4470_v1 }
 0x223   : > { %v3842_v58 = vpop.permute.xlu0 %3841  ;;  %v3852_v61 = vpop.permute.xlu1 %3851 }
 0x224   : > { %v3844_v59 = vunpack.i.h.bf16 %v3842_v58  ;;  %v3843_v60 = vunpack.i.l.bf16 %v3842_v58  ;;  %v3854_v2 = vunpack.i.h.bf16 %v3852_v61  ;;  %v3853_v3 = vunpack.i.l.bf16 %v3852_v61 }
 0x226   : > { %v1092_v62 = vpack.c.bf16 %v3844_v59, %v3843_v60  ;;  %v1093_v7 = vpack.c.bf16 %v3854_v2, %v3853_v3 }
 0x227   : > { %v3847_v63 = vpop.permute.xlu0 %3846  ;;  %v3857_v10 = vpop.permute.xlu1 %3856 }
 0x228   : > { %v1171_v4 = vsel %vm1119_vm1, %v1092_v62, 0  ;;  %v3849_v5 = vunpack.i.h.bf16 %v3847_v63  ;;  %v3848_v6 = vunpack.i.l.bf16 %v3847_v63  ;;  %v1218_v13 = vsel %vm1119_vm1, %v1093_v7, 0 }
 0x229   : > { %3563 = vmatpush3.bf16.xpose.msra.mxu1 %v1171_v4  ;;  %v3859_v14 = vunpack.i.h.bf16 %v3857_v10  ;;  %v3858_v15 = vunpack.i.l.bf16 %v3857_v10 }
 0x22a   : > { %3568 = vmatprep.subr.bf16.mxu1 %v4470_v1  ;;  %v1068_v9 = vpack.c.bf16 %v3849_v5, %v3848_v6  ;;  %v3870_v5 = vpack.i.bf16 %v4907_v56, %v4905_v55 }
 0x22b   : > { %v3862_v8 = vpop.permute.xlu0 %3861  ;;  %v1069_v17 = vpack.c.bf16 %v3859_v14, %v3858_v15  ;;  %v3867_v18 = vpop.permute.xlu1 %3866 }
 0x22c   : > { %v3864_v11 = vunpack.i.h.bf16 %v3862_v8  ;;  %v3863_v12 = vunpack.i.l.bf16 %v3862_v8  ;;  %v3869_v20 = vunpack.i.h.bf16 %v3867_v18  ;;  %v3868_v21 = vunpack.i.l.bf16 %v3867_v18 }
 0x22e   : > { %v1094_v16 = vpack.c.bf16 %v3864_v11, %v3863_v12  ;;  %v1070_v22 = vpack.c.bf16 %v3869_v20, %v3868_v21 }
 0x230   : > { %3565 = vmatmul.mubr.msk.bf16.vlgmr.msra.gmra.mxu1 %vm1119_vm1, %v1068_v9  ;;  %v1265_v19 = vsel %vm1119_vm1, %v1094_v16, 0 }
 0x231   : > { %3569 = vmatpush3.bf16.xpose.msra.mxu1 %v1218_v13  ;;  %3570 = vmatprep.mubr.msk.bf16.mxu1 %vm4471_vm0, %v4470_v1 }
 0x232   : > { %3574 = vmatprep.subr.bf16.mxu1 %v4470_v1 }
 0x238   : > { %3571 = vmatmul.mubr.msk.bf16.vlgmr.msra.gmra.mxu1 %vm1119_vm1, %v1069_v17 }
 0x239   : > { %3575 = vmatpush3.bf16.xpose.msra.mxu1 %v1265_v19  ;;  %3576 = vmatprep.mubr.msk.bf16.mxu1 %vm4471_vm0, %v4470_v1 }
 0x23a   : > { %3586 = vmatprep.subr.bf16.mxu1 %v4470_v1 }
 0x240   : > { %3577 = vmatmul.mubr.msk.bf16.vlgmr.msra.gmra.mxu1 %vm1119_vm1, %v1070_v22 }
 0x241   : > { %3588 = vmatprep.mubr.msk.bf16.mxu1 %vm4471_vm0, %v4470_v1 }
 0x27a   : > { %v1160_v27 = vpop.f32.mrf.mxu1 }
 0x27b   : > { %v1312_v28 = vsel %vm783_vm2, -1e+30, %v1160_v27 }
 0x27c   : > { %v3560_v32 = vpop.f32.mrf.mxu1  ;;  %v1321_v33 = vsel %vm1320_vm3, %v1312_v28, -inf }
 0x27d   : > { %1322 = vmax.xlane.f32.xlu0 %v1321_v33 }
 0x27e   : > { %v1163_v34 = vpop.f32.mrf.mxu1 }
 0x27f   : > { %v1313_v36 = vsel %vm784_vm4, -1e+30, %v1163_v34 }
 0x280   : > { %v3561_v37 = vpop.f32.mrf.mxu1  ;;  %v1324_v29 = vsel %vm1320_vm3, %v1313_v36, -inf }
 0x281   : > { %1325 = vmax.xlane.f32.xlu1 %v1324_v29 }
 0x2f0   : > { %v1207_v38 = vpop.f32.mrf.mxu1 }
 0x2f1   : > { %v1314_v39 = vsel %vm783_vm2, -1e+30, %v1207_v38 }
 0x2f2   : > { %v3566_v40 = vpop.f32.mrf.mxu1  ;;  %v1327_v41 = vsel %vm1320_vm3, %v1314_v39, -inf }
 0x2f3   : > { %1328 = vmax.xlane.f32.xlu0 %v1327_v41 }
 0x2f4   : > { %v1210_v42 = vpop.f32.mrf.mxu1 }
 0x2f5   : > { %v1315_v43 = vsel %vm784_vm4, -1e+30, %v1210_v42 }
 0x2f6   : > { %v3567_v44 = vpop.f32.mrf.mxu1  ;;  %v1330_v45 = vsel %vm1320_vm3, %v1315_v43, -inf }
 0x2f7   : > { %1331 = vmax.xlane.f32.xlu0 %v1330_v45 }
 0x2f8   : > { %v1254_v46 = vpop.f32.mrf.mxu1 }
 0x2f9   : > { %v1316_v47 = vsel %vm783_vm2, -1e+30, %v1254_v46 }
 0x2fa   : > { %v3572_v48 = vpop.f32.mrf.mxu1  ;;  %v1333_v49 = vsel %vm1320_vm3, %v1316_v47, -inf }
 0x2fb   : > { %1334 = vmax.xlane.f32.xlu1 %v1333_v49 }
 0x2fc   : > { %v1257_v50 = vpop.f32.mrf.mxu1 }
 0x2fd   : > { %v1317_v51 = vsel %vm784_vm4, -1e+30, %v1257_v50 }
 0x2fe   : > { %v3573_v52 = vpop.f32.mrf.mxu1  ;;  %v1336_v53 = vsel %vm1320_vm3, %v1317_v51, -inf }
 0x2ff   : > { %1337 = vmax.xlane.f32.xlu0 %v1336_v53 }
 0x300   : > { %v1301_v54 = vpop.f32.mrf.mxu1 }
 0x301   : > { %v1318_v57 = vsel %vm783_vm2, -1e+30, %v1301_v54 }
 0x302   : > { %v3578_v58 = vpop.f32.mrf.mxu1  ;;  %v1339_v59 = vsel %vm1320_vm3, %v1318_v57, -inf }
 0x303   : > { %1340 = vmax.xlane.f32.xlu1 %v1339_v59 }
 0x304   : > { %v1304_v60 = vpop.f32.mrf.mxu1 }
 0x305   : > { %v1319_v61 = vsel %vm784_vm4, -1e+30, %v1304_v60 }
 0x306   : > { %v3579_v62 = vpop.f32.mrf.mxu1  ;;  %v1342_v63 = vsel %vm1320_vm3, %v1319_v61, -inf  ;;  %v1323_v6 = vpop.xlane.xlu0 %1322 }
 0x307   : > { %1343 = vmax.xlane.f32.xlu0 %v1342_v63  ;;  %v1345_v8 = vsub.f32 %v1312_v28, %v1323_v6 }
 0x309   : > { %v1353_v9 = vmul.f32 1.442695, %v1345_v8 }
 0x30a   : > { %v1326_v2 = vpop.xlane.xlu1 %1325 }
 0x30b   : > { %v1346_v3 = vsub.f32 %v1313_v36, %v1326_v2 }
 0x30d   : > { %v1355_v4 = vmul.f32 1.442695, %v1346_v3 }
 0x30f   : > { %4080 = vpow2.f32 %v1355_v4 }
 0x310   : > { %4082 = vpow2.f32 %v1353_v9 }
 0x314   : > { %3871 = vrot.lane.b32.xlu1 %v3870_v5, %s4473_s4 }
 0x31c   : > { %v4953_v30 = vpop.eup %4080 }
 0x31d   : > { %v1372_v7 = vsel %vm1320_vm3, %v4953_v30, 0.0  ;;  %v4083_v10 = vpop.eup %4082 }
 0x31e   : > { %1373 = vadd.xlane.f32.xlu0 %v1372_v7  ;;  %v1369_v11 = vsel %vm1320_vm3, %v4083_v10, 0.0 }
 0x338   : > { %1370 = vadd.xlane.f32.xlu1 %v1369_v11 }
 0x37c   : > { %v1329_v12 = vpop.xlane.xlu0 %1328 }
 0x37d   : > { %v1347_v13 = vsub.f32 %v1314_v39, %v1329_v12 }
 0x37f   : > { %v1357_v14 = vmul.f32 1.442695, %v1347_v13 }
 0x380   : > { %v1332_v55 = vpop.xlane.xlu0 %1331 }
 0x381   : > { %4084 = vpow2.f32 %v1357_v14  ;;  %v1348_v56 = vsub.f32 %v1315_v43, %v1332_v55 }
 0x383   : > { %v1359_v15 = vmul.f32 1.442695, %v1348_v56 }
 0x384   : > { %v1335_v16 = vpop.xlane.xlu1 %1334 }
 0x385   : > { %4086 = vpow2.f32 %v1359_v15  ;;  %v1349_v17 = vsub.f32 %v1316_v47, %v1335_v16 }
 0x387   : > { %v1361_v18 = vmul.f32 1.442695, %v1349_v17 }
 0x388   : > { %v1338_v19 = vpop.xlane.xlu0 %1337 }
 0x389   : > { %4088 = vpow2.f32 %v1361_v18  ;;  %v1350_v20 = vsub.f32 %v1317_v51, %v1338_v19 }
 0x38b   : > { %v1363_v21 = vmul.f32 1.442695, %v1350_v20 }
 0x38c   : > { %v1341_v22 = vpop.xlane.xlu1 %1340 }
 0x38d   : > { %4090 = vpow2.f32 %v1363_v21  ;;  %v1351_v25 = vsub.f32 %v1318_v57, %v1341_v22  ;;  %v3992_v22 = vld [vmem:[#allocation8 + $0x38] sm:$0xff]  }
 0x38e   : > { %v4085_v26 = vpop.eup %4084 }
 0x38f   : > { %v1365_v27 = vmul.f32 1.442695, %v1351_v25  ;;  %v1375_v28 = vsel %vm1320_vm3, %v4085_v26, 0.0  ;;  %v3993_v25 = vld [vmem:[#allocation8 + $0x30] sm:$0xff]  }
 0x390   : > { %1376 = vadd.xlane.f32.xlu1 %v1375_v28  ;;  %v3872_v32 = vpop.permute.xlu1 %3871  ;;  %v1344_v33 = vpop.xlane.xlu0 %1343 }
 0x391   : > { %4092 = vpow2.f32 %v1365_v27  ;;  %v3874_v34 = vunpack.i.h.bf16 %v3872_v32  ;;  %v3873_v36 = vunpack.i.l.bf16 %v3872_v32  ;;  %v1352_v37 = vsub.f32 %v1319_v61, %v1344_v33 }
 0x392   : > { %v4087_v29 = vpop.eup %4086 }
 0x393   : > { %v1116_v38 = vpack.c.bf16 %v3874_v34, %v3873_v36  ;;  %v1367_v39 = vmul.f32 1.442695, %v1352_v37  ;;  %v1378_v40 = vsel %vm1320_vm3, %v4087_v29, 0.0  ;;  %v3995_v34 = vld [vmem:[#allocation8 + $0x20] sm:$0xff]   ;;  %v3996_v36 = vld [vmem:[#allocation8 + $0x18] sm:$0xff]  }
 0x394   : > { %1379 = vadd.xlane.f32.xlu0 %v1378_v40 }
 0x395   : > { %4094 = vpow2.f32 %v1367_v39  ;;  %3587 = vmatpush3.bf16.msra.mxu1 %v1116_v38  ;;  %v3997_v38 = vld [vmem:[#allocation8 + $0x10] sm:$0xff]  }
 0x396   : > { %v4089_v41 = vpop.eup %4088  ;;  %3598 = vmatprep.subr.bf16.mxu1 %v4470_v1 }
 0x397   : > { %v1381_v42 = vsel %vm1320_vm3, %v4089_v41, 0.0 }
 0x398   : > { %1382 = vadd.xlane.f32.xlu1 %v1381_v42 }
 0x39a   : > { %v4091_v43 = vpop.eup %4090 }
 0x39b   : > { %v1384_v44 = vsel %vm1320_vm3, %v4091_v43, 0.0 }
 0x39c   : > { %1385 = vadd.xlane.f32.xlu0 %v1384_v44  ;;  %v3999_v44 = vld [vmem:[#allocation8] sm:$0xff]  }
 0x39e   : > { %v4093_v45 = vpop.eup %4092 }
 0x39f   : > { %v1387_v46 = vsel %vm1320_vm3, %v4093_v45, 0.0 }
 0x3a0   : > { %1388 = vadd.xlane.f32.xlu1 %v1387_v46 }
 0x3a2   : > { %v4095_v47 = vpop.eup %4094 }
 0x3a3   : > { %v1390_v48 = vsel %vm1320_vm3, %v4095_v47, 0.0 }
 0x3a4   : > { %1391 = vadd.xlane.f32.xlu0 %v1390_v48 }
 0x3a7   : > { %v1374_v49 = vpop.xlane.xlu0 %1373 }
 0x3a8   : > { %4096 = vrcp.f32 %v1374_v49 }
 0x3b1   : > { %3881 = vrot.lane.b32.xlu1 %v3870_v5, %s4474_s12 }
 0x3b5   : > { %v4097_v51 = vpop.eup %4096 }
 0x3b6   : > { %v1402_v54 = vmul.f32 %v4097_v51, %v4953_v30 }
 0x3ba   : > { %3876 = vrot.lane.b32.xlu0 %v3870_v5, %s4472_s18 }
 0x3c1   : > { %v1371_v50 = vpop.xlane.xlu1 %1370 }
 0x3c2   : > { %4098 = vrcp.f32 %v1371_v50 }
 0x3cf   : > { %v4099_v52 = vpop.eup %4098 }
 0x3d0   : > { %v1401_v53 = vmul.f32 %v4099_v52, %v4083_v10 }
 0x3d2   : > { %v1409_v57 = vpack.c.bf16 %v1402_v54, %v1401_v53 }
 0x3d4   : > { %3583 = vmatmul.mubr.msk.bf16.vlgmr.msra.gmra.mxu0 %vm1320_vm3, %v1409_v57 }
 0x3d5   : > { %3594 = vmatprep.mubr.msk.bf16.mxu0 %vm4471_vm0, %v4470_v1 }
 0x419   : > { %v1377_v58 = vpop.xlane.xlu1 %1376 }
 0x41a   : > { %4100 = vrcp.f32 %v1377_v58 }
 0x41d   : > { %v1380_v59 = vpop.xlane.xlu0 %1379 }
 0x41e   : > { %4102 = vrcp.f32 %v1380_v59 }
 0x421   : > { %v1383_v60 = vpop.xlane.xlu1 %1382 }
 0x422   : > { %4104 = vrcp.f32 %v1383_v60 }
 0x425   : > { %v1386_v61 = vpop.xlane.xlu0 %1385 }
 0x426   : > { %4106 = vrcp.f32 %v1386_v61 }
 0x427   : > { %v4101_v62 = vpop.eup %4100 }
 0x428   : > { %v1403_v3 = vmul.f32 %v4101_v62, %v4085_v26  ;;  %v3994_v26 = vld [vmem:[#allocation8 + $0x28] sm:$0xff]  }
 0x429   : > { %v1389_v63 = vpop.xlane.xlu1 %1388 }
 0x42a   : > { %4108 = vrcp.f32 %v1389_v63 }
 0x42b   : > { %v4103_v2 = vpop.eup %4102 }
 0x42c   : > { %v1404_v4 = vmul.f32 %v4103_v2, %v4087_v29 }
 0x42d   : > { %v3882_v5 = vpop.permute.xlu1 %3881  ;;  %v1392_v30 = vpop.xlane.xlu0 %1391 }
 0x42e   : > { %v3884_v6 = vunpack.i.h.bf16 %v3882_v5  ;;  %v3883_v7 = vunpack.i.l.bf16 %v3882_v5  ;;  %4110 = vrcp.f32 %v1392_v30  ;;  %v1410_v8 = vpack.c.bf16 %v1404_v4, %v1403_v3 }
 0x42f   : > { %v4105_v10 = vpop.eup %4104 }
 0x430   : > { %v1118_v9 = vpack.c.bf16 %v3884_v6, %v3883_v7  ;;  %3589 = vmatmul.mubr.msk.bf16.vlgmr.msra.gmra.mxu1 %vm1320_vm3, %v1410_v8  ;;  %v1405_v56 = vmul.f32 %v4105_v10, %v4089_v41  ;;  %v3998_v41 = vld [vmem:[#allocation8 + $0x8] sm:$0xff]  }
 0x431   : > { %v3877_v11 = vpop.permute.xlu0 %3876  ;;  %3600 = vmatprep.mubr.msk.bf16.mxu1 %vm4471_vm0, %v4470_v1 }
 0x432   : > { %v3879_v12 = vunpack.i.h.bf16 %v3877_v11  ;;  %v3878_v13 = vunpack.i.l.bf16 %v3877_v11  ;;  %3599 = vmatpush3.bf16.msra.mxu1 %v1118_v9  ;;  %v3353_v9 = vld [vmem:[%s5213_s5] ss:$0 sm:$0xff] }
 0x433   : > { %v4107_v14 = vpop.eup %4106  ;;  %3624 = vmatprep.subr.bf16.mxu1 %v4470_v1 }
 0x434   : > { %v1117_v55 = vpack.c.bf16 %v3879_v12, %v3878_v13  ;;  %v1406_v15 = vmul.f32 %v4107_v14, %v4091_v43 }
 0x436   : > { %3593 = vmatpush3.bf16.msra.mxu0 %v1117_v55  ;;  %v1411_v16 = vpack.c.bf16 %v1406_v15, %v1405_v56 }
 0x437   : > { %3604 = vmatprep.subr.bf16.mxu0 %v4470_v1  ;;  %v4109_v17 = vpop.eup %4108 }
 0x438   : > { %v1407_v19 = vmul.f32 %v4109_v17, %v4093_v45  ;;  %v4001_v17 = vld [vmem:[#allocation10 + $0xac] ss:$12 sps:$4 sm:$0xff]  }
 0x439   : > { %3595 = vmatmul.mubr.msk.bf16.vlgmr.msra.gmra.mxu0 %vm1320_vm3, %v1411_v16  ;;  %v4000_v16 = vld [vmem:[#allocation10 + $0xb0] ss:$12 sps:$4 sm:$0xff]  }
 0x43a   : > { %3620 = vmatprep.mubr.msk.bf16.mxu0 %vm4471_vm0, %v4470_v1  ;;  %3605 = vmatpush3.bf16.msra.mxu0 %v3992_v22  ;;  %v4009_v22 = vld [vmem:[#allocation10 + $0x68] ss:$12 sps:$4 sm:$0xff]  }
 0x43b   : > { %v4111_v18 = vpop.eup %4110  ;;  %3606 = vmatprep.subr.bf16.mxu0 %v4470_v1 }
 0x43c   : > { %v1408_v20 = vmul.f32 %v4111_v18, %v4095_v47  ;;  %v4003_v18 = vld [vmem:[#allocation10 + $0x98] ss:$12 sps:$4 sm:$0xff]  }
 0x43e   : > { %v1412_v21 = vpack.c.bf16 %v1408_v20, %v1407_v19  ;;  %3607 = vmatpush3.bf16.msra.mxu0 %v3993_v25  ;;  %v4004_v19 = vld [vmem:[#allocation10 + $0x94] ss:$12 sps:$4 sm:$0xff]   ;;  %v4010_v25 = vld [vmem:[#allocation10 + $0x64] ss:$12 sps:$4 sm:$0xff]  }
 0x43f   : > { %3608 = vmatprep.subr.bf16.mxu0 %v4470_v1  ;;  %v4013_v20 = vld [vmem:[#allocation10 + $0xa8] ss:$12 sps:$4 sm:$0xff]  }
 0x440   : > { %3601 = vmatmul.mubr.msk.bf16.vlgmr.msra.gmra.mxu1 %vm1320_vm3, %v1412_v21  ;;  %v4006_v21 = vld [vmem:[#allocation10 + $0x80] ss:$12 sps:$4 sm:$0xff]  }
 0x441   : > { %3640 = vmatprep.mubr.msk.bf16.mxu1 %vm4471_vm0, %v4470_v1  ;;  %3625 = vmatpush3.bf16.msra.mxu1 %v4013_v20 }
 0x442   : > { %3609 = vmatpush3.bf16.msra.mxu0 %v3994_v26  ;;  %3626 = vmatprep.subr.bf16.mxu1 %v4470_v1  ;;  %v4014_v26 = vld [vmem:[#allocation10 + $0x4c] ss:$12 sps:$4 sm:$0xff]  }
 0x443   : > { %3610 = vmatprep.subr.bf16.mxu0 %v4470_v1 }
 0x446   : > { %3611 = vmatpush3.bf16.msra.mxu0 %v3995_v34 }
 0x447   : > { %3612 = vmatprep.subr.bf16.mxu0 %v4470_v1 }
 0x44a   : > { %3613 = vmatpush3.bf16.msra.mxu0 %v3996_v36 }
 0x44b   : > { %3614 = vmatprep.subr.bf16.mxu0 %v4470_v1 }
 0x44e   : > { %3615 = vmatpush3.bf16.msra.mxu0 %v3997_v38  ;;  %v4016_v38 = vld [vmem:[#allocation10 + $0x38] ss:$12 sps:$4 sm:$0xff]  }
 0x44f   : > { %3616 = vmatprep.subr.bf16.mxu0 %v4470_v1 }
 0x452   : > { %3617 = vmatpush3.bf16.msra.mxu0 %v3998_v41  ;;  %v4020_v41 = vld [vmem:[#allocation10 + $0x20] ss:$12 sps:$4 sm:$0xff]  }
 0x453   : > { %3618 = vmatprep.subr.bf16.mxu0 %v4470_v1 }
 0x456   : > { %3619 = vmatpush3.bf16.msra.mxu0 %v3999_v44  ;;  %v4024_v44 = vld [vmem:[#allocation10 + $0x8] ss:$12 sps:$4 sm:$0xff]  }
 0x457   : > { %1998 = vmatprep.subr.bf16.mxu0 %v4000_v16 }
 0x494   : > { %v1450_v27 = vpop.f32.mrf.mxu0 }
 0x496   : > { %v3584_v28 = vpop.f32.mrf.mxu0 }
 0x498   : > { %v1453_v32 = vpop.f32.mrf.mxu0 }
 0x49a   : > { %v3585_v33 = vpop.f32.mrf.mxu0 }
 0x4f0   : > { %v1494_v37 = vpop.f32.mrf.mxu1 }
 0x4f2   : > { %v3590_v29 = vpop.f32.mrf.mxu1 }
 0x4f4   : > { %v1497_v39 = vpop.f32.mrf.mxu1 }
 0x4f5   : > { %v3885_v40 = vpack.i.bf16 %v1497_v39, %v1494_v37  ;;  %v4017_v39 = vld [vmem:[#allocation10 + $0x90] ss:$12 sps:$4 sm:$0xff]  }
 0x4f6   : > { %v3591_v42 = vpop.f32.mrf.mxu1  ;;  %3627 = vmatpush3.bf16.msra.mxu1 %v4017_v39 }
 0x4f7   : > { %3886 = vrot.lane.b32.xlu1 %v3885_v40, %s4474_s12  ;;  %v4018_v40 = vld [vmem:[#allocation10 + $0x34] ss:$12 sps:$4 sm:$0xff]   ;;  %3628 = vmatprep.subr.bf16.mxu1 %v4470_v1  ;;  %v4021_v42 = vld [vmem:[#allocation10 + $0x78] ss:$12 sps:$4 sm:$0xff]  }
 0x4f9   : > { %v1538_v43 = vpop.f32.mrf.mxu0 }
 0x4fa   : > { %3629 = vmatpush3.bf16.msra.mxu1 %v4021_v42 }
 0x4fb   : > { %v3596_v45 = vpop.f32.mrf.mxu0  ;;  %3630 = vmatprep.subr.bf16.mxu1 %v4470_v1 }
 0x4fc   : > { %v4025_v45 = vld [vmem:[#allocation10 + $0x60] ss:$12 sps:$4 sm:$0xff]  }
 0x4fd   : > { %v1541_v46 = vpop.f32.mrf.mxu0 }
 0x4fe   : > { %v3890_v47 = vpack.i.bf16 %v1541_v46, %v1538_v43  ;;  %v4022_v43 = vld [vmem:[#allocation10 + $0x1c] ss:$12 sps:$4 sm:$0xff]   ;;  %v4026_v46 = vld [vmem:[#allocation10 + $0x4] ss:$12 sps:$4 sm:$0xff]   ;;  %3631 = vmatpush3.bf16.msra.mxu1 %v4025_v45 }
 0x4ff   : > { %v3597_v48 = vpop.f32.mrf.mxu0  ;;  %3632 = vmatprep.subr.bf16.mxu1 %v4470_v1 }
 0x500   : > { %3891 = vrot.lane.b32.xlu0 %v3890_v47, %s4472_s18  ;;  %v1582_v49 = vpop.f32.mrf.mxu1  ;;  %v776_v47 = vld [vmem:[%s687_s1] sm:$0xff]  ;;  %v777_v48 = vld [vmem:[%s687_s1 + $0x8] sm:$0xff] }
 0x502   : > { %v3602_v50 = vpop.f32.mrf.mxu1 }
 0x503   : > { %v4028_v50 = vld [vmem:[#allocation10 + $0x48] ss:$12 sps:$4 sm:$0xff]  }
 0x504   : > { %v1585_v51 = vpop.f32.mrf.mxu1  ;;  %3633 = vmatpush3.bf16.msra.mxu1 %v4028_v50 }
 0x505   : > { %v3895_v52 = vpack.i.bf16 %v1585_v51, %v1582_v49  ;;  %v1906_v49 = vpack.c.bf16 %v777_v48, %v776_v47  ;;  %v4029_v51 = vld [vmem:[#allocation10 + $0x30] ss:$12 sps:$4 sm:$0xff]   ;;  %3634 = vmatprep.subr.bf16.mxu1 %v4470_v1 }
 0x506   : > { %v3603_v53 = vpop.f32.mrf.mxu1 }
 0x507   : > { %3896 = vrot.lane.b32.xlu1 %v3895_v52, %s4473_s4  ;;  %v4030_v52 = vld [vmem:[#allocation10 + $0x18] ss:$12 sps:$4 sm:$0xff]   ;;  %v4031_v53 = vld [vmem:[#allocation10] ss:$12 sps:$4 sm:$0xff]  }
 0x508   : > { %3635 = vmatpush3.bf16.msra.mxu1 %v4029_v51 }
 0x509   : > { %3636 = vmatprep.subr.bf16.mxu1 %v4470_v1 }
 0x50c   : > { %3637 = vmatpush3.bf16.msra.mxu1 %v4030_v52 }
 0x50d   : > { %3638 = vmatprep.subr.bf16.mxu1 %v4470_v1 }
 0x510   : > { %3639 = vmatpush3.bf16.msra.mxu1 %v4031_v53 }
 0x511   : > { %3644 = vmatprep.subr.bf16.mxu1 %v4470_v1 }
 0x569   : > { %v3887_v54 = vpop.permute.xlu1 %3886 }
 0x56a   : > { %v3889_v58 = vunpack.i.h.bf16 %v3887_v54  ;;  %v3888_v59 = vunpack.i.l.bf16 %v3887_v54 }
 0x56c   : > { %v1614_v63 = vsel %vm1119_vm1, %v1453_v32, %v3889_v58  ;;  %v1613_v2 = vsel %vm1119_vm1, %v1450_v27, %v3888_v59 }
 0x572   : > { %v3892_v57 = vpop.permute.xlu0 %3891 }
 0x573   : > { %v3894_v60 = vunpack.i.h.bf16 %v3892_v57  ;;  %v3893_v61 = vunpack.i.l.bf16 %v3892_v57 }
 0x575   : > { %v1616_v5 = vsel %vm1615_vm5, %v1613_v2, %v3893_v61  ;;  %v1617_v30 = vsel %vm1615_vm5, %v1614_v63, %v3894_v60  ;;  %v3362_v2 = vld [vmem:[%s5222_s14] ss:$0 sm:$0xff] }
 0x579   : > { %v3897_v62 = vpop.permute.xlu1 %3896 }
 0x57a   : > { %v3899_v3 = vunpack.i.h.bf16 %v3897_v62  ;;  %v3898_v4 = vunpack.i.l.bf16 %v3897_v62 }
 0x57c   : > { %v1620_v6 = vsel %vm1618_vm6, %v1617_v30, %v3899_v3  ;;  %v1619_v7 = vsel %vm1618_vm6, %v1616_v5, %v3898_v4  ;;  %v3363_v30 = vld [vmem:[%s5223_s15] ss:$0 sm:$0xff] }
 0x57d   : > { %v1637_v8 = vpack.c.bf16 %v1620_v6, %v1619_v7 }
 0x57f   : > { %3621 = vmatmul.mubr.bf16.vlgmr.msra.gmra.mxu0 %v1637_v8 }
 0x580   : > { %2030 = vmatprep.mubr.bf16.mxu0 %v4469_v0  ;;  %1999 = vmatpush1.bf16.msra.mxu0 %v4001_v17 }
 0x581   : > { %2000 = vmatprep.subr.bf16.mxu0 %v4003_v18 }
 0x584   : > { %2001 = vmatpush1.bf16.msra.mxu0 %v4004_v19 }
 0x585   : > { %2002 = vmatprep.subr.bf16.mxu0 %v4006_v21 }
 0x63f   : > { %v1727_v10 = vpop.f32.mrf.mxu0 }
 0x640   : > { %v1728_v11 = vadd.f32 %v3353_v9, %v1727_v10  ;;  %v1809_v10 = vld [vmem:[%s5215_s7] sm:$0x7] }
 0x641   : > { %v3622_v12 = vpop.f32.mrf.mxu0 }
 0x642   : > { %v1734_v13 = vadd.f32 %v1728_v11, %v4859_v23  ;;  %v4007_v23 = vld [vmem:[#allocation10 + $0x7c] ss:$12 sps:$4 sm:$0xff]   ;;  %v1907_v11 = vrot.slane %v1809_v10, 1 }
 0x643   : > { %v1730_v14 = vpop.f32.mrf.mxu0  ;;  %2003 = vmatpush1.bf16.msra.mxu0 %v4007_v23 }
 0x644   : > { %v1731_v55 = vadd.f32 %v3353_v9, %v1730_v14  ;;  %1736 = vadd.xlane.f32.xlu0 %v1734_v13  ;;  %2004 = vmatprep.subr.bf16.mxu0 %v4009_v22  ;;  %v1911_v12 = vrot.slane %v1907_v11, %v4889_v35  ;;  %v1915_v14 = vrot.slane %v1907_v11, %v4883_v31 }
 0x645   : > { %v3623_v56 = vpop.f32.mrf.mxu0 }
 0x646   : > { %v1735_v15 = vadd.f32 %v1731_v55, %v4863_v24  ;;  %v4012_v24 = vld [vmem:[#allocation10 + $0x50] ss:$12 sps:$4 sm:$0xff]  }
 0x647   : > { %2005 = vmatpush1.bf16.msra.mxu0 %v4010_v25 }
 0x648   : > { %1738 = vadd.xlane.f32.xlu1 %v1735_v15  ;;  %2006 = vmatprep.subr.bf16.mxu0 %v4012_v24 }
 0x64b   : > { %2007 = vmatpush1.bf16.msra.mxu0 %v4014_v26 }
 0x64c   : > { %2008 = vmatprep.subr.bf16.mxu0 %v4016_v38 }
 0x64f   : > { %2009 = vmatpush1.bf16.msra.mxu0 %v4018_v40 }
 0x650   : > { %2010 = vmatprep.subr.bf16.mxu0 %v4020_v41 }
 0x653   : > { %2011 = vmatpush1.bf16.msra.mxu0 %v4022_v43 }
 0x654   : > { %2012 = vmatprep.subr.bf16.mxu0 %v4024_v44 }
 0x657   : > { %2013 = vmatpush1.bf16.msra.mxu0 %v4026_v46 }
 0x658   : > { %3668 = vmatprep.subr.bf16.mxu0 %v4470_v1 }
 0x65a   : > { %2031 = vmatmul.mubr.bf16.vlgmr.msra.gmra.mxu0 %v1906_v49 }
 0x65b   : > { %3670 = vmatprep.mubr.msk.bf16.mxu0 %vm4471_vm0, %v4470_v1 }
 0x6cd   : > { %v1737_v27 = vpop.xlane.xlu0 %1736 }
 0x6ce   : > { %v1741_v28 = vmul.f32 0.0078125, %v1737_v27 }
 0x6d0   : > { %v1743_v32 = vsub.f32 %v1734_v13, %v1741_v28 }
 0x6d1   : > { %v1739_v33 = vpop.xlane.xlu1 %1738 }
 0x6d2   : > { %v1742_v34 = vmul.f32 0.0078125, %v1739_v33  ;;  %v1745_v36 = vmul.f32 %v1743_v32, %v1743_v32 }
 0x6d4   : > { %v1744_v37 = vsub.f32 %v1735_v15, %v1742_v34  ;;  %1747 = vadd.xlane.f32.xlu0 %v1745_v36 }
 0x6d6   : > { %v1746_v29 = vmul.f32 %v1744_v37, %v1744_v37 }
 0x6d8   : > { %1749 = vadd.xlane.f32.xlu0 %v1746_v29 }
 0x71a   : > { %v2032_v13 = vpop.f32.mrf.mxu0 }
 0x71b   : > { %v2033_v56 = vadd.f32 %v2032_v13, %v1911_v12 }
 0x71c   : > { %v2034_v55 = vpop.f32.mrf.mxu0 }
 0x71d   : > { %v2035_v16 = vadd.f32 %v2034_v55, %v1915_v14 }
 0x71e   : > { %v2036_v15 = vpop.f32.mrf.mxu0 }
 0x71f   : > { %v2037_v17 = vadd.f32 %v2036_v15, %v1911_v12 }
 0x720   : > { %v2038_v18 = vpop.f32.mrf.mxu0 }
 0x721   : > { %v2039_v19 = vadd.f32 %v2038_v18, %v1915_v14  ;;  %v3900_v20 = vpack.i.bf16 %v2037_v17, %v2033_v56  ;;  %v2085_v21 = vpack.c.bf16 %v2037_v17, %v2033_v56 }
 0x723   : > { %3901 = vrot.lane.b32.xlu1 %v3900_v20, %s4473_s4  ;;  %v2109_v23 = vpack.c.bf16 %v2039_v19, %v2035_v16  ;;  %v2117_v22 = vsel %vm1119_vm1, %v2085_v21, 0  ;;  %v5041_v25 = vpack.i.bf16 %v2039_v19, %v2035_v16 }
 0x725   : > { %3669 = vmatpush3.bf16.msra.mxu0 %v2109_v23 }
 0x726   : > { %3680 = vmatprep.subr.bf16.mxu0 %v4470_v1 }
 0x727   : > { %3911 = vrot.lane.b32.xlu1 %v3900_v20, %s4472_s18 }
 0x75d   : > { %v1748_v54 = vpop.xlane.xlu0 %1747 }
 0x75e   : > { %v1751_v57 = vmul.f32 0.0078125, %v1748_v54 }
 0x760   : > { %v1753_v58 = vadd.f32 1e-05, %v1751_v57 }
 0x761   : > { %v1750_v59 = vpop.xlane.xlu0 %1749 }
 0x762   : > { %4112 = vrsqrt.f32 %v1753_v58  ;;  %v1752_v60 = vmul.f32 0.0078125, %v1750_v59 }
 0x764   : > { %v1754_v61 = vadd.f32 1e-05, %v1752_v60 }
 0x766   : > { %4114 = vrsqrt.f32 %v1754_v61 }
 0x76f   : > { %v4113_v62 = vpop.eup %4112 }
 0x770   : > { %v1757_v63 = vmul.f32 %v4113_v62, %v1743_v32  ;;  %v1815_v32 = vrot.slane %v1809_v10, %v4889_v35 }
 0x772   : > { %v1766_v5 = vmul.f32 %v3362_v2, %v1757_v63 }
 0x773   : > { %v4115_v3 = vpop.eup %4114 }
 0x774   : > { %v1758_v4 = vmul.f32 %v4115_v3, %v1744_v37  ;;  %v5025_v7 = vadd.f32 %v3363_v30, %v1766_v5 }
 0x776   : > { %v1767_v6 = vmul.f32 %v3362_v2, %v1758_v4 }
 0x778   : > { %v5027_v8 = vadd.f32 %v3363_v30, %v1767_v6 }
 0x77a   : > { %v1810_v9 = vpack.c.bf16 %v5027_v8, %v5025_v7 }
 0x77c   : > { %3641 = vmatmul.mubr.bf16.vlgmr.msra.gmra.mxu1 %v1810_v9 }
 0x77d   : > { %3646 = vmatprep.mubr.msk.bf16.mxu1 %vm4471_vm0, %v4470_v1  ;;  %3645 = vmatpush3.bf16.xpose.msra.mxu1 %v2117_v22 }
 0x77e   : > { %3650 = vmatprep.subr.bf16.mxu1 %v4470_v1 }
 0x795   : > { %v3902_v24 = vpop.permute.xlu1 %3901 }
 0x796   : > { %v3904_v27 = vunpack.i.h.bf16 %v3902_v24  ;;  %v3903_v28 = vunpack.i.l.bf16 %v3902_v24 }
 0x798   : > { %v2086_v36 = vpack.c.bf16 %v3904_v27, %v3903_v28 }
 0x799   : > { %v3912_v42 = vpop.permute.xlu1 %3911 }
 0x79a   : > { %v2164_v41 = vsel %vm1119_vm1, %v2086_v36, 0  ;;  %v3914_v43 = vunpack.i.h.bf16 %v3912_v42  ;;  %v3913_v44 = vunpack.i.l.bf16 %v3912_v42 }
 0x79c   : > { %v2087_v46 = vpack.c.bf16 %v3914_v43, %v3913_v44 }
 0x79e   : > { %v2211_v54 = vsel %vm1119_vm1, %v2087_v46, 0 }
 0x83c   : > { %v1899_v26 = vpop.f32.mrf.mxu1 }
 0x83d   : > { %v1900_v37 = vadd.f32 %v1899_v26, %v1815_v32 }
 0x83e   : > { %v3642_v33 = vpop.f32.mrf.mxu1 }
 0x840   : > { %v1902_v34 = vpop.f32.mrf.mxu1 }
 0x841   : > { %v1903_v29 = vadd.f32 %v1902_v34, %v1815_v32 }
 0x842   : > { %v3643_v38 = vpop.f32.mrf.mxu1 }
 0x843   : > { %v2061_v39 = vpack.c.bf16 %v1903_v29, %v1900_v37  ;;  %v3915_v40 = vpack.i.bf16 %v1903_v29, %v1900_v37 }
 0x845   : > { %3916 = vrot.lane.b32.xlu1 %v3915_v40, %s4472_s18  ;;  %3906 = vrot.lane.b32.xlu0 %v3915_v40, %s4473_s4 }
 0x846   : > { %3647 = vmatmul.mubr.msk.bf16.vlgmr.msra.gmra.mxu1 %vm1119_vm1, %v2061_v39 }
 0x847   : > { %3651 = vmatpush3.bf16.xpose.msra.mxu1 %v2164_v41  ;;  %3652 = vmatprep.mubr.msk.bf16.mxu1 %vm4471_vm0, %v4470_v1 }
 0x848   : > { %3656 = vmatprep.subr.bf16.mxu1 %v4470_v1 }
 0x849   : > { %3926 = vrot.lane.b32.xlu1 %v3915_v40, %s4474_s12  ;;  %3921 = vrot.lane.b32.xlu0 %v3900_v20, %s4474_s12 }
 0x8b7   : > { %v3907_v45 = vpop.permute.xlu0 %3906  ;;  %v3917_v50 = vpop.permute.xlu1 %3916 }
 0x8b8   : > { %v3909_v47 = vunpack.i.h.bf16 %v3907_v45  ;;  %v3908_v48 = vunpack.i.l.bf16 %v3907_v45  ;;  %v3919_v57 = vunpack.i.h.bf16 %v3917_v50  ;;  %v3918_v58 = vunpack.i.l.bf16 %v3917_v50 }
 0x8ba   : > { %v2062_v49 = vpack.c.bf16 %v3909_v47, %v3908_v48  ;;  %v2063_v60 = vpack.c.bf16 %v3919_v57, %v3918_v58 }
 0x8bb   : > { %v3922_v51 = vpop.permute.xlu0 %3921  ;;  %v3927_v61 = vpop.permute.xlu1 %3926 }
 0x8bc   : > { %v3924_v52 = vunpack.i.h.bf16 %v3922_v51  ;;  %v3923_v53 = vunpack.i.l.bf16 %v3922_v51  ;;  %3653 = vmatmul.mubr.msk.bf16.vlgmr.msra.gmra.mxu1 %vm1119_vm1, %v2062_v49  ;;  %v3929_v63 = vunpack.i.h.bf16 %v3927_v61  ;;  %v3928_v2 = vunpack.i.l.bf16 %v3927_v61 }
 0x8bd   : > { %3657 = vmatpush3.bf16.xpose.msra.mxu1 %v2211_v54  ;;  %3658 = vmatprep.mubr.msk.bf16.mxu1 %vm4471_vm0, %v4470_v1 }
 0x8be   : > { %3662 = vmatprep.subr.bf16.mxu1 %v4470_v1  ;;  %v2088_v59 = vpack.c.bf16 %v3924_v52, %v3923_v53  ;;  %v2064_v3 = vpack.c.bf16 %v3929_v63, %v3928_v2 }
 0x8c0   : > { %v2258_v62 = vsel %vm1119_vm1, %v2088_v59, 0 }
 0x8c4   : > { %3659 = vmatmul.mubr.msk.bf16.vlgmr.msra.gmra.mxu1 %vm1119_vm1, %v2063_v60 }
 0x8c5   : > { %3663 = vmatpush3.bf16.xpose.msra.mxu1 %v2258_v62  ;;  %3664 = vmatprep.mubr.msk.bf16.mxu1 %vm4471_vm0, %v4470_v1 }
 0x8c6   : > { %3674 = vmatprep.subr.bf16.mxu1 %v4470_v1 }
 0x8cc   : > { %3665 = vmatmul.mubr.msk.bf16.vlgmr.msra.gmra.mxu1 %vm1119_vm1, %v2064_v3 }
 0x8cd   : > { %3676 = vmatprep.mubr.msk.bf16.mxu1 %vm4471_vm0, %v4470_v1 }
 0x906   : > { %v2153_v4 = vpop.f32.mrf.mxu1 }
 0x907   : > { %v2301_v5 = vsel %vm1320_vm3, %v2153_v4, -inf }
 0x908   : > { %2302 = vmax.xlane.f32.xlu0 %v2301_v5  ;;  %v3648_v30 = vpop.f32.mrf.mxu1 }
 0x90a   : > { %v2156_v6 = vpop.f32.mrf.mxu1 }
 0x90b   : > { %v2304_v9 = vsel %vm1320_vm3, %v2156_v6, -inf }
 0x90c   : > { %2305 = vmax.xlane.f32.xlu1 %v2304_v9  ;;  %v3649_v10 = vpop.f32.mrf.mxu1 }
 0x97c   : > { %v2200_v11 = vpop.f32.mrf.mxu1 }
 0x97d   : > { %v2307_v12 = vsel %vm1320_vm3, %v2200_v11, -inf }
 0x97e   : > { %2308 = vmax.xlane.f32.xlu0 %v2307_v12  ;;  %v3654_v13 = vpop.f32.mrf.mxu1 }
 0x980   : > { %v2203_v14 = vpop.f32.mrf.mxu1 }
 0x981   : > { %v2310_v55 = vsel %vm1320_vm3, %v2203_v14, -inf }
 0x982   : > { %2311 = vmax.xlane.f32.xlu0 %v2310_v55  ;;  %v3655_v56 = vpop.f32.mrf.mxu1 }
 0x984   : > { %v2247_v15 = vpop.f32.mrf.mxu1 }
 0x985   : > { %v2313_v16 = vsel %vm1320_vm3, %v2247_v15, -inf }
 0x986   : > { %2314 = vmax.xlane.f32.xlu1 %v2313_v16  ;;  %v3660_v17 = vpop.f32.mrf.mxu1 }
 0x988   : > { %v2250_v18 = vpop.f32.mrf.mxu1 }
 0x989   : > { %v2316_v19 = vsel %vm1320_vm3, %v2250_v18, -inf }
 0x98a   : > { %2317 = vmax.xlane.f32.xlu0 %v2316_v19  ;;  %v3661_v20 = vpop.f32.mrf.mxu1 }
 0x98c   : > { %v2294_v21 = vpop.f32.mrf.mxu1 }
 0x98d   : > { %v2319_v23 = vsel %vm1320_vm3, %v2294_v21, -inf }
 0x98e   : > { %2320 = vmax.xlane.f32.xlu1 %v2319_v23  ;;  %v3666_v22 = vpop.f32.mrf.mxu1 }
 0x990   : > { %v2297_v24 = vpop.f32.mrf.mxu1 }
 0x991   : > { %v2322_v26 = vsel %vm1320_vm3, %v2297_v24, -inf  ;;  %v2303_v36 = vpop.xlane.xlu0 %2302 }
 0x992   : > { %2323 = vmax.xlane.f32.xlu0 %v2322_v26  ;;  %v3667_v27 = vpop.f32.mrf.mxu1  ;;  %v2325_v29 = vsub.f32 %v2153_v4, %v2303_v36 }
 0x994   : > { %v2333_v38 = vmul.f32 1.442695, %v2325_v29 }
 0x995   : > { %v2306_v28 = vpop.xlane.xlu1 %2305 }
 0x996   : > { %v2326_v32 = vsub.f32 %v2156_v6, %v2306_v28 }
 0x998   : > { %v2335_v33 = vmul.f32 1.442695, %v2326_v32 }
 0x99a   : > { %4116 = vpow2.f32 %v2335_v33 }
 0x99b   : > { %4118 = vpow2.f32 %v2333_v38 }
 0x99f   : > { %3931 = vrot.lane.b32.xlu1 %v5041_v25, %s4473_s4 }
 0x9a7   : > { %v5078_v34 = vpop.eup %4116 }
 0x9a8   : > { %v2352_v37 = vsel %vm1320_vm3, %v5078_v34, 0.0  ;;  %v4119_v39 = vpop.eup %4118 }
 0x9a9   : > { %2353 = vadd.xlane.f32.xlu0 %v2352_v37  ;;  %v2349_v40 = vsel %vm1320_vm3, %v4119_v39, 0.0 }
 0x9c3   : > { %2350 = vadd.xlane.f32.xlu1 %v2349_v40 }
 0xa07   : > { %v2309_v41 = vpop.xlane.xlu0 %2308 }
 0xa08   : > { %v2327_v42 = vsub.f32 %v2200_v11, %v2309_v41 }
 0xa0a   : > { %v2337_v43 = vmul.f32 1.442695, %v2327_v42 }
 0xa0b   : > { %v2312_v44 = vpop.xlane.xlu0 %2311 }
 0xa0c   : > { %4120 = vpow2.f32 %v2337_v43  ;;  %v2328_v45 = vsub.f32 %v2203_v14, %v2312_v44 }
 0xa0e   : > { %v2339_v46 = vmul.f32 1.442695, %v2328_v45 }
 0xa0f   : > { %v2315_v47 = vpop.xlane.xlu1 %2314 }
 0xa10   : > { %4122 = vpow2.f32 %v2339_v46  ;;  %v2329_v48 = vsub.f32 %v2247_v15, %v2315_v47 }
 0xa12   : > { %v2341_v49 = vmul.f32 1.442695, %v2329_v48 }
 0xa13   : > { %v2318_v50 = vpop.xlane.xlu0 %2317 }
 0xa14   : > { %4124 = vpow2.f32 %v2341_v49  ;;  %v2330_v51 = vsub.f32 %v2250_v18, %v2318_v50 }
 0xa16   : > { %v2343_v52 = vmul.f32 1.442695, %v2330_v51 }
 0xa17   : > { %v2321_v53 = vpop.xlane.xlu1 %2320 }
 0xa18   : > { %4126 = vpow2.f32 %v2343_v52  ;;  %v2331_v54 = vsub.f32 %v2294_v21, %v2321_v53  ;;  %v4032_v53 = vld [vmem:[#allocation11 + $0x38] sm:$0xff]  }
 0xa19   : > { %v4121_v57 = vpop.eup %4120 }
 0xa1a   : > { %v2345_v58 = vmul.f32 1.442695, %v2331_v54  ;;  %v2355_v59 = vsel %vm1320_vm3, %v4121_v57, 0.0  ;;  %v4033_v54 = vld [vmem:[#allocation11 + $0x30] sm:$0xff]  }
 0xa1b   : > { %2356 = vadd.xlane.f32.xlu1 %v2355_v59  ;;  %v3932_v60 = vpop.permute.xlu1 %3931  ;;  %v2324_v61 = vpop.xlane.xlu0 %2323 }
 0xa1c   : > { %4128 = vpow2.f32 %v2345_v58  ;;  %v3934_v62 = vunpack.i.h.bf16 %v3932_v60  ;;  %v3933_v63 = vunpack.i.l.bf16 %v3932_v60  ;;  %v2332_v2 = vsub.f32 %v2297_v24, %v2324_v61 }
 0xa1d   : > { %v4123_v3 = vpop.eup %4122 }
 0xa1e   : > { %v2110_v4 = vpack.c.bf16 %v3934_v62, %v3933_v63  ;;  %v2347_v5 = vmul.f32 1.442695, %v2332_v2  ;;  %v2358_v30 = vsel %vm1320_vm3, %v4123_v3, 0.0  ;;  %v4035_v62 = vld [vmem:[#allocation11 + $0x20] sm:$0xff]   ;;  %v4036_v63 = vld [vmem:[#allocation11 + $0x18] sm:$0xff]  }
 0xa1f   : > { %2359 = vadd.xlane.f32.xlu0 %v2358_v30  ;;  %v4038_v30 = vld [vmem:[#allocation11 + $0x8] sm:$0xff]  }
 0xa20   : > { %4130 = vpow2.f32 %v2347_v5  ;;  %3675 = vmatpush3.bf16.msra.mxu1 %v2110_v4 }
 0xa21   : > { %v4125_v6 = vpop.eup %4124  ;;  %3686 = vmatprep.subr.bf16.mxu1 %v4470_v1 }
 0xa22   : > { %v2361_v9 = vsel %vm1320_vm3, %v4125_v6, 0.0 }
 0xa23   : > { %2362 = vadd.xlane.f32.xlu1 %v2361_v9 }
 0xa25   : > { %v4127_v10 = vpop.eup %4126 }
 0xa26   : > { %v2364_v11 = vsel %vm1320_vm3, %v4127_v10, 0.0 }
 0xa27   : > { %2365 = vadd.xlane.f32.xlu0 %v2364_v11  ;;  %v4039_v11 = vld [vmem:[#allocation11] sm:$0xff]  }
 0xa29   : > { %v4129_v12 = vpop.eup %4128 }
 0xa2a   : > { %v2367_v13 = vsel %vm1320_vm3, %v4129_v12, 0.0 }
 0xa2b   : > { %2368 = vadd.xlane.f32.xlu1 %v2367_v13 }
 0xa2d   : > { %v4131_v14 = vpop.eup %4130 }
 0xa2e   : > { %v2370_v55 = vsel %vm1320_vm3, %v4131_v14, 0.0 }
 0xa2f   : > { %2371 = vadd.xlane.f32.xlu0 %v2370_v55 }
 0xa32   : > { %v2354_v56 = vpop.xlane.xlu0 %2353 }
 0xa33   : > { %4132 = vrcp.f32 %v2354_v56 }
 0xa3c   : > { %3941 = vrot.lane.b32.xlu1 %v5041_v25, %s4474_s12 }
 0xa40   : > { %v4133_v16 = vpop.eup %4132 }
 0xa41   : > { %v2382_v19 = vmul.f32 %v4133_v16, %v5078_v34 }
 0xa45   : > { %3936 = vrot.lane.b32.xlu0 %v5041_v25, %s4472_s18 }
 0xa4c   : > { %v2351_v15 = vpop.xlane.xlu1 %2350 }
 0xa4d   : > { %4134 = vrcp.f32 %v2351_v15 }
 0xa5a   : > { %v4135_v17 = vpop.eup %4134 }
 0xa5b   : > { %v2381_v18 = vmul.f32 %v4135_v17, %v4119_v39 }
 0xa5d   : > { %v2389_v20 = vpack.c.bf16 %v2382_v19, %v2381_v18 }
 0xa5f   : > { %3671 = vmatmul.mubr.msk.bf16.vlgmr.msra.gmra.mxu0 %vm1320_vm3, %v2389_v20 }
 0xa60   : > { %3682 = vmatprep.mubr.msk.bf16.mxu0 %vm4471_vm0, %v4470_v1 }
 0xaa4   : > { %v2357_v21 = vpop.xlane.xlu1 %2356 }
 0xaa5   : > { %4136 = vrcp.f32 %v2357_v21 }
 0xaa8   : > { %v2360_v23 = vpop.xlane.xlu0 %2359 }
 0xaa9   : > { %4138 = vrcp.f32 %v2360_v23 }
 0xaac   : > { %v2363_v25 = vpop.xlane.xlu1 %2362 }
 0xaad   : > { %4140 = vrcp.f32 %v2363_v25 }
 0xab0   : > { %v2366_v22 = vpop.xlane.xlu0 %2365 }
 0xab1   : > { %4142 = vrcp.f32 %v2366_v22 }
 0xab2   : > { %v4137_v24 = vpop.eup %4136 }
 0xab3   : > { %v2383_v28 = vmul.f32 %v4137_v24, %v4121_v57  ;;  %v4034_v57 = vld [vmem:[#allocation11 + $0x28] sm:$0xff]  }
 0xab4   : > { %v2369_v26 = vpop.xlane.xlu1 %2368 }
 0xab5   : > { %4144 = vrcp.f32 %v2369_v26 }
 0xab6   : > { %v4139_v27 = vpop.eup %4138 }
 0xab7   : > { %v2384_v32 = vmul.f32 %v4139_v27, %v4123_v3  ;;  %v4037_v3 = vld [vmem:[#allocation11 + $0x10] sm:$0xff]  }
 0xab8   : > { %v3942_v33 = vpop.permute.xlu1 %3941  ;;  %v2372_v34 = vpop.xlane.xlu0 %2371 }
 0xab9   : > { %v3944_v36 = vunpack.i.h.bf16 %v3942_v33  ;;  %v3943_v37 = vunpack.i.l.bf16 %v3942_v33  ;;  %4146 = vrcp.f32 %v2372_v34  ;;  %v2390_v29 = vpack.c.bf16 %v2384_v32, %v2383_v28 }
 0xaba   : > { %v4141_v39 = vpop.eup %4140 }
 0xabb   : > { %v2112_v38 = vpack.c.bf16 %v3944_v36, %v3943_v37  ;;  %3677 = vmatmul.mubr.msk.bf16.vlgmr.msra.gmra.mxu1 %vm1320_vm3, %v2390_v29  ;;  %v2385_v45 = vmul.f32 %v4141_v39, %v4125_v6  ;;  %v3396_v37 = vld [vmem:[%s5217_s9] ss:$0 sm:$0xff] }
 0xabc   : > { %v3937_v40 = vpop.permute.xlu0 %3936  ;;  %3688 = vmatprep.mubr.msk.bf16.mxu1 %vm4471_vm0, %v4470_v1 }
 0xabd   : > { %v3939_v41 = vunpack.i.h.bf16 %v3937_v40  ;;  %v3938_v42 = vunpack.i.l.bf16 %v3937_v40  ;;  %3687 = vmatpush3.bf16.msra.mxu1 %v2112_v38 }
 0xabe   : > { %v4143_v43 = vpop.eup %4142 }
 0xabf   : > { %v2111_v44 = vpack.c.bf16 %v3939_v41, %v3938_v42  ;;  %v2386_v46 = vmul.f32 %v4143_v43, %v4127_v10 }
 0xac1   : > { %3681 = vmatpush3.bf16.msra.mxu0 %v2111_v44  ;;  %v2391_v47 = vpack.c.bf16 %v2386_v46, %v2385_v45  ;;  %v4040_v45 = vld [vmem:[#allocation13 + $0x70] ss:$8 sps:$4 sm:$0xff]   ;;  %v4042_v46 = vld [vmem:[#allocation13 + $0x74] ss:$8 sps:$4 sm:$0xff]  }
 0xac2   : > { %3692 = vmatprep.subr.bf16.mxu0 %v4470_v1  ;;  %v4145_v48 = vpop.eup %4144  ;;  %2863 = vmatprep.subr.bf16.mxu1 %v4042_v46 }
 0xac3   : > { %v2387_v50 = vmul.f32 %v4145_v48, %v4129_v12 }
 0xac4   : > { %3683 = vmatmul.mubr.msk.bf16.vlgmr.msra.gmra.mxu0 %vm1320_vm3, %v2391_v47 }
 0xac5   : > { %3708 = vmatprep.mubr.msk.bf16.mxu0 %vm4471_vm0, %v4470_v1  ;;  %3693 = vmatpush3.bf16.msra.mxu0 %v4032_v53  ;;  %v4045_v53 = vld [vmem:[#allocation13 + $0x64] ss:$8 sps:$4 sm:$0xff]  }
 0xac6   : > { %v4147_v49 = vpop.eup %4146  ;;  %3694 = vmatprep.subr.bf16.mxu0 %v4470_v1 }
 0xac7   : > { %v2388_v51 = vmul.f32 %v4147_v49, %v4131_v14 }
 0xac9   : > { %v2392_v52 = vpack.c.bf16 %v2388_v51, %v2387_v50  ;;  %3695 = vmatpush3.bf16.msra.mxu0 %v4033_v54  ;;  %v4043_v54 = vld [vmem:[#allocation13 + $0x60] ss:$8 sps:$4 sm:$0xff]  }
 0xaca   : > { %3696 = vmatprep.subr.bf16.mxu0 %v4470_v1 }
 0xacb   : > { %3689 = vmatmul.mubr.msk.bf16.vlgmr.msra.gmra.mxu1 %vm1320_vm3, %v2392_v52 }
 0xacc   : > { %2895 = vmatprep.mubr.bf16.mxu1 %v4469_v0  ;;  %2864 = vmatpush1.bf16.msra.mxu1 %v4040_v45 }
 0xacd   : > { %3697 = vmatpush3.bf16.msra.mxu0 %v4034_v57  ;;  %2865 = vmatprep.subr.bf16.mxu1 %v4045_v53  ;;  %v4048_v57 = vld [vmem:[#allocation13 + $0x54] ss:$8 sps:$4 sm:$0xff]  }
 0xace   : > { %3698 = vmatprep.subr.bf16.mxu0 %v4470_v1 }
 0xad0   : > { %2866 = vmatpush1.bf16.msra.mxu1 %v4043_v54 }
 0xad1   : > { %3699 = vmatpush3.bf16.msra.mxu0 %v4035_v62  ;;  %2867 = vmatprep.subr.bf16.mxu1 %v4048_v57  ;;  %v4052_v62 = vld [vmem:[#allocation13 + $0x30] ss:$8 sps:$4 sm:$0xff]  }
 0xad2   : > { %3700 = vmatprep.subr.bf16.mxu0 %v4470_v1 }
 0xad5   : > { %3701 = vmatpush3.bf16.msra.mxu0 %v4036_v63  ;;  %v4057_v63 = vld [vmem:[#allocation13 + $0x24] ss:$8 sps:$4 sm:$0xff]  }
 0xad6   : > { %3702 = vmatprep.subr.bf16.mxu0 %v4470_v1 }
 0xad9   : > { %3703 = vmatpush3.bf16.msra.mxu0 %v4037_v3  ;;  %v4058_v3 = vld [vmem:[#allocation13 + $0x10] ss:$8 sps:$4 sm:$0xff]  }
 0xada   : > { %3704 = vmatprep.subr.bf16.mxu0 %v4470_v1 }
 0xadd   : > { %3705 = vmatpush3.bf16.msra.mxu0 %v4038_v30  ;;  %v4064_v30 = vld [vmem:[#allocation14 + $0x78] sm:$0xff]  }
 0xade   : > { %3706 = vmatprep.subr.bf16.mxu0 %v4470_v1 }
 0xae1   : > { %3707 = vmatpush3.bf16.msra.mxu0 %v4039_v11  ;;  %v4068_v11 = vld [vmem:[#allocation14 + $0x68] sm:$0xff]  }
 0xae2   : > { %3514 = vmatprep.subr.bf16.mxu0 %v4064_v30 }
 0xb1f   : > { %v2430_v58 = vpop.f32.mrf.mxu0 }
 0xb21   : > { %v3672_v59 = vpop.f32.mrf.mxu0 }
 0xb22   : > { %v4049_v59 = vld [vmem:[#allocation13 + $0x40] ss:$8 sps:$4 sm:$0xff]  }
 0xb23   : > { %v2433_v60 = vpop.f32.mrf.mxu0 }
 0xb25   : > { %v3673_v61 = vpop.f32.mrf.mxu0 }
 0xb26   : > { %v4054_v61 = vld [vmem:[#allocation13 + $0x34] ss:$8 sps:$4 sm:$0xff]  }
 0xb7b   : > { %v2474_v0 = vpop.f32.mrf.mxu1 }
 0xb7d   : > { %v3678_v2 = vpop.f32.mrf.mxu1 }
 0xb7e   : > { %v4060_v2 = vld [vmem:[#allocation13 + $0x14] ss:$8 sps:$4 sm:$0xff]  }
 0xb7f   : > { %v2477_v4 = vpop.f32.mrf.mxu1 }
 0xb80   : > { %v3945_v5 = vpack.i.bf16 %v2477_v4, %v2474_v0  ;;  %v4055_v0 = vld [vmem:[#allocation13 + $0x20] ss:$8 sps:$4 sm:$0xff]   ;;  %v4063_v4 = vld [vmem:[#allocation13 + $0x4] ss:$8 sps:$4 sm:$0xff]  }
 0xb81   : > { %v3679_v6 = vpop.f32.mrf.mxu1 }
 0xb82   : > { %3946 = vrot.lane.b32.xlu1 %v3945_v5, %s4474_s12  ;;  %v4061_v5 = vld [vmem:[#allocation13] ss:$8 sps:$4 sm:$0xff]   ;;  %v4065_v6 = vld [vmem:[#allocation14 + $0x38] sm:$0xff]  }
 0xb84   : > { %v2518_v9 = vpop.f32.mrf.mxu0 }
 0xb86   : > { %v3684_v10 = vpop.f32.mrf.mxu0 }
 0xb87   : > { %v4067_v10 = vld [vmem:[#allocation14 + $0x30] sm:$0xff]  }
 0xb88   : > { %v2521_v12 = vpop.f32.mrf.mxu0 }
 0xb89   : > { %v3950_v13 = vpack.i.bf16 %v2521_v12, %v2518_v9  ;;  %v4066_v9 = vld [vmem:[#allocation14 + $0x70] sm:$0xff]   ;;  %v4069_v12 = vld [vmem:[#allocation14 + $0x28] sm:$0xff]  }
 0xb8a   : > { %v3685_v14 = vpop.f32.mrf.mxu0 }
 0xb8b   : > { %3951 = vrot.lane.b32.xlu0 %v3950_v13, %s4472_s18  ;;  %v2562_v55 = vpop.f32.mrf.mxu1  ;;  %v4070_v13 = vld [vmem:[#allocation14 + $0x60] sm:$0xff]   ;;  %s3133_s18 = scalar_lea.sflag [#allocation4], %s4819_s11 }
 0xb8c   : > { %v4071_v14 = vld [vmem:[#allocation14 + $0x20] sm:$0xff]  }
 0xb8d   : > { %v3690_v56 = vpop.f32.mrf.mxu1 }
 0xb8e   : > { %v4073_v56 = vld [vmem:[#allocation14 + $0x18] sm:$0xff]  }
 0xb8f   : > { %v2565_v15 = vpop.f32.mrf.mxu1 }
 0xb90   : > { %v3955_v16 = vpack.i.bf16 %v2565_v15, %v2562_v55  ;;  %v4072_v55 = vld [vmem:[#allocation14 + $0x58] sm:$0xff]  }
 0xb91   : > { %v3691_v17 = vpop.f32.mrf.mxu1 }
 0xb92   : > { %3956 = vrot.lane.b32.xlu1 %v3955_v16, %s4473_s4  ;;  %s5302_s4 = sld [smem:[#allocation38_spill]] }
 0xbf4   : > { %v3947_v18 = vpop.permute.xlu1 %3946 }
 0xbf5   : > { %v3949_v20 = vunpack.i.h.bf16 %v3947_v18  ;;  %v3948_v21 = vunpack.i.l.bf16 %v3947_v18 }
 0xbf7   : > { %v2594_v22 = vsel %vm1119_vm1, %v2433_v60, %v3949_v20  ;;  %v2593_v24 = vsel %vm1119_vm1, %v2430_v58, %v3948_v21  ;;  %v4046_v58 = vld [vmem:[#allocation13 + $0x50] ss:$8 sps:$4 sm:$0xff]   ;;  %v4051_v60 = vld [vmem:[#allocation13 + $0x44] ss:$8 sps:$4 sm:$0xff]  }
 0xbf8   : > { %2868 = vmatpush1.bf16.msra.mxu1 %v4046_v58 }
 0xbf9   : > { %2869 = vmatprep.subr.bf16.mxu1 %v4051_v60 }
 0xbfc   : > { %2870 = vmatpush1.bf16.msra.mxu1 %v4049_v59 }
 0xbfd   : > { %v3952_v19 = vpop.permute.xlu0 %3951  ;;  %2871 = vmatprep.subr.bf16.mxu1 %v4054_v61 }
 0xbfe   : > { %v3954_v1 = vunpack.i.h.bf16 %v3952_v19  ;;  %v3953_v23 = vunpack.i.l.bf16 %v3952_v19 }
 0xc00   : > { %v2595_v28 = vsel %vm1615_vm5, %v2593_v24, %v3953_v23  ;;  %v2596_v32 = vsel %vm1615_vm5, %v2594_v22, %v3954_v1  ;;  %2872 = vmatpush1.bf16.msra.mxu1 %v4052_v62  ;;  %v3405_v23 = vld [vmem:[%s5224_s16] ss:$0 sm:$0xff] }
 0xc01   : > { %2873 = vmatprep.subr.bf16.mxu1 %v4057_v63 }
 0xc04   : > { %v3957_v25 = vpop.permute.xlu1 %3956  ;;  %2874 = vmatpush1.bf16.msra.mxu1 %v4055_v0 }
 0xc05   : > { %v3959_v26 = vunpack.i.h.bf16 %v3957_v25  ;;  %v3958_v27 = vunpack.i.l.bf16 %v3957_v25  ;;  %2875 = vmatprep.subr.bf16.mxu1 %v4060_v2 }
 0xc07   : > { %v2598_v33 = vsel %vm1618_vm6, %v2596_v32, %v3959_v26  ;;  %v2597_v34 = vsel %vm1618_vm6, %v2595_v28, %v3958_v27  ;;  %v3406_v26 = vld [vmem:[%s5301_s30] ss:$0 sm:$0xff]  ;;  %s5307_s30 = sld [smem:[#allocation44_spill]] }
 0xc08   : > { %v2615_v36 = vpack.c.bf16 %v2598_v33, %v2597_v34  ;;  %2876 = vmatpush1.bf16.msra.mxu1 %v4058_v3  ;;  %v4074_v34 = vld [vmem:[#allocation14 + $0x50] sm:$0xff]  }
 0xc09   : > { %2877 = vmatprep.subr.bf16.mxu1 %v4063_v4 }
 0xc0a   : > { %3709 = vmatmul.mubr.bf16.vlgmr.msra.gmra.mxu0 %v2615_v36  ;;  %v4075_v36 = vld [vmem:[#allocation14 + $0x10] sm:$0xff]  }
 0xc0b   : > { %3515 = vmatpush3.bf16.msra.mxu0 %v4065_v6 }
 0xc0c   : > { %2878 = vmatpush1.bf16.msra.mxu1 %v4061_v5  ;;  %3516 = vmatprep.subr.bf16.mxu0 %v4066_v9 }
 0xc0d   : > { %s5163_s28 = scalar_lea.hbm %s5307_s30, %s3443_s10 }
 0xc0f   : > { %3517 = vmatpush3.bf16.msra.mxu0 %v4067_v10 }
 0xc10   : > { %3518 = vmatprep.subr.bf16.mxu0 %v4068_v11 }
 0xc13   : > { %3519 = vmatpush3.bf16.msra.mxu0 %v4069_v12 }
 0xc14   : > { %3520 = vmatprep.subr.bf16.mxu0 %v4070_v13 }
 0xc17   : > { %3521 = vmatpush3.bf16.msra.mxu0 %v4071_v14 }
 0xc18   : > { %3522 = vmatprep.subr.bf16.mxu0 %v4072_v55 }
 0xc1b   : > { %3523 = vmatpush3.bf16.msra.mxu0 %v4073_v56 }
 0xc1c   : > { %3524 = vmatprep.subr.bf16.mxu0 %v4074_v34 }
 0xc1f   : > { %3525 = vmatpush3.bf16.msra.mxu0 %v4075_v36 }
 0xcca   : > { %v2705_v29 = vpop.f32.mrf.mxu0 }
 0xccb   : > { %v2706_v38 = vadd.f32 %v3396_v37, %v2705_v29  ;;  %v4077_v29 = vld [vmem:[#allocation14 + $0x8] sm:$0xff]  }
 0xccc   : > { %v3710_v39 = vpop.f32.mrf.mxu0 }
 0xccd   : > { %v2712_v40 = vadd.f32 %v2706_v38, %v5025_v7  ;;  %v4078_v38 = vld [vmem:[#allocation14 + $0x40] sm:$0xff]  }
 0xcce   : > { %v2708_v41 = vpop.f32.mrf.mxu0  ;;  %v4079_v39 = vld [vmem:[#allocation14] sm:$0xff]  }
 0xccf   : > { %v2709_v42 = vadd.f32 %v3396_v37, %v2708_v41  ;;  %2714 = vadd.xlane.f32.xlu0 %v2712_v40  ;;  %v4076_v37 = vld [vmem:[#allocation14 + $0x48] sm:$0xff]  }
 0xcd0   : > { %v3711_v43 = vpop.f32.mrf.mxu0  ;;  %3526 = vmatprep.subr.bf16.mxu0 %v4076_v37 }
 0xcd1   : > { %v2713_v44 = vadd.f32 %v2709_v42, %v5027_v8  ;;  %3527 = vmatpush3.bf16.msra.mxu0 %v4077_v29 }
 0xcd2   : > { %3528 = vmatprep.subr.bf16.mxu0 %v4078_v38 }
 0xcd3   : > { %2716 = vadd.xlane.f32.xlu1 %v2713_v44 }
 0xcd5   : > { %3529 = vmatpush3.bf16.msra.mxu0 %v4079_v39 }
 0xd58   : > { %v2715_v47 = vpop.xlane.xlu0 %2714 }
 0xd59   : > { %v2718_v48 = vmul.f32 0.0078125, %v2715_v47 }
 0xd5b   : > { %v5128_v49 = vsub.f32 %v2712_v40, %v2718_v48  ;;  %v2771_v40 = vld [vmem:[%s5302_s4] sm:$0x3]  ;;  %s4372_s4 = sshll.u32 %s4475_s17, 4  ;;  %s4373_s4 = int_to_ptr.vmem [resolvable:$false] %s4372_s4 }
 0xd5c   : > { %v2717_v50 = vpop.xlane.xlu1 %2716  ;;  %v2780_v42 = vrot.slane %v2771_v40, %v4883_v31  ;;  %v2776_v43 = vrot.slane %v2771_v40, %v4889_v35  ;;  %v3423_v31 = vld [vmem:[%s5303_s29] ss:$0 sm:$0xff]  ;;  %s4374_s12 = scalar_lea.vmem %s4373_s4, 512  ;;  %p4375_p12 = scmp.lt.s32.totalorder %s5165_s27, %s4373_s4 }
 0xd5d   : > { %v2719_v51 = vmul.f32 0.0078125, %v2717_v50  ;;  %v2722_v7 = vmul.f32 %v5128_v49, %v5128_v49  ;;  %p4376_p2 = scmp.lt.s32.totalorder %s4374_s12, %s4368_s3 }
 0xd5f   : > { %v5132_v52 = vsub.f32 %v2713_v44, %v2719_v51  ;;  %2724 = vadd.xlane.f32.xlu0 %v2722_v7  ;;  %p4377_p3 = por %p4376_p2, %p4375_p12 }
 0xd61   : > { %v2723_v8 = vmul.f32 %v5132_v52, %v5132_v52  ;;  %p4378_p7 = pnand %p4377_p3, %p4371_p4 }
 0xd63   : > { %2726 = vadd.xlane.f32.xlu0 %v2723_v8 }
 0xde8   : > { %v2725_v15 = vpop.xlane.xlu0 %2724 }
 0xde9   : > { %v2728_v16 = vmul.f32 0.0078125, %v2725_v15 }
 0xdeb   : > { %v2730_v17 = vadd.f32 1e-05, %v2728_v16 }
 0xdec   : > { %v2727_v18 = vpop.xlane.xlu0 %2726 }
 0xded   : > { %4148 = vrsqrt.f32 %v2730_v17  ;;  %v2729_v19 = vmul.f32 0.0078125, %v2727_v18  ;;  %v3440_v17 = vld [vmem:[%s5304_s6] ss:$0 sm:$0xff] }
 0xdef   : > { %v2731_v20 = vadd.f32 1e-05, %v2729_v19  ;;  %v3441_v19 = vld [vmem:[%s5305_s2] ss:$0 sm:$0xff] }
 0xdf1   : > { %4150 = vrsqrt.f32 %v2731_v20 }
 0xdfa   : > { %v4149_v21 = vpop.eup %4148 }
 0xdfb   : > { %v2734_v1 = vmul.f32 %v4149_v21, %v5128_v49 }
 0xdfd   : > { %v2743_v24 = vmul.f32 %v3405_v23, %v2734_v1 }
 0xdfe   : > { %v4151_v25 = vpop.eup %4150 }
 0xdff   : > { %v2735_v22 = vmul.f32 %v4151_v25, %v5132_v52  ;;  %v2752_v28 = vadd.f32 %v3406_v26, %v2743_v24 }
 0xe01   : > { %v2744_v27 = vmul.f32 %v3405_v23, %v2735_v22 }
 0xe03   : > { %v2753_v32 = vadd.f32 %v3406_v26, %v2744_v27 }
 0xe05   : > { %v2770_v33 = vpack.c.bf16 %v2753_v32, %v2752_v28 }
 0xe07   : > { %2896 = vmatmul.mubr.bf16.vlgmr.msra.gmra.mxu1 %v2770_v33 }
 0xec7   : > { %v2897_v41 = vpop.f32.mrf.mxu1 }
 0xec8   : > { %v2898_v48 = vadd.f32 %v2897_v41, %v2776_v43 }
 0xec9   : > { %v2899_v44 = vpop.f32.mrf.mxu1 }
 0xeca   : > { %v2900_v46 = vadd.f32 %v2899_v44, %v2780_v42  ;;  %v2906_v8 = vmax.f32 %v2898_v48, 0.0 }
 0xecb   : > { %v2901_v45 = vpop.f32.mrf.mxu1 }
 0xecc   : > { %v2902_v47 = vadd.f32 %v2901_v45, %v2776_v43  ;;  %v2907_v7 = vmax.f32 %v2900_v46, 0.0 }
 0xecd   : > { %v2903_v49 = vpop.f32.mrf.mxu1 }
 0xece   : > { %v2904_v50 = vadd.f32 %v2903_v49, %v2780_v42  ;;  %v2908_v51 = vmax.f32 %v2902_v47, 0.0 }
 0xed0   : > { %v2909_v52 = vmax.f32 %v2904_v50, 0.0  ;;  %v2942_v54 = vpack.c.bf16 %v2908_v51, %v2906_v8 }
 0xed2   : > { %v2943_v53 = vpack.c.bf16 %v2909_v52, %v2907_v7 }
 0xed4   : > { %3079 = vmatprep.mubr.bf16.mxu0 %v2943_v53 }
 0xed5   : > { %3080 = vmatmul.mubr.bf16.vlgmr.msra.gmra.mxu0 %v2942_v54 }
 0xf95   : > { %v3530_v57 = vpop.f32.mrf.mxu0 }
 0xf97   : > { %v3531_v35 = vpop.f32.mrf.mxu0 }
 0xf98   : > { %v3532_v58 = vadd.f32 %v3531_v35, %v3530_v57 }
 0xf99   : > { %v3533_v59 = vpop.f32.mrf.mxu0 }
 0xf9a   : > { %v3082_v60 = vadd.f32 %v3532_v58, %v3423_v31 }
 0xf9b   : > { %v3534_v61 = vpop.f32.mrf.mxu0 }
 0xf9c   : > { %v3535_v62 = vadd.f32 %v3534_v61, %v3533_v59  ;;  %v3088_v63 = vadd.f32 %v3082_v60, %v2752_v28 }
 0xf9e   : > { %v3085_v0 = vadd.f32 %v3535_v62, %v3423_v31  ;;  %3090 = vadd.xlane.f32.xlu1 %v3088_v63 }
 0xfa0   : > { %v3089_v2 = vadd.f32 %v3085_v0, %v2753_v32 }
 0xfa2   : > { %3092 = vadd.xlane.f32.xlu0 %v3089_v2 }
0x1027   : > { %v3091_v3 = vpop.xlane.xlu1 %3090 }
0x1028   : > { %v3094_v4 = vmul.f32 0.0078125, %v3091_v3 }
0x102a   : > { %v3096_v5 = vsub.f32 %v3088_v63, %v3094_v4 }
0x102b   : > { %v3093_v30 = vpop.xlane.xlu0 %3092 }
0x102c   : > { %v3095_v6 = vmul.f32 0.0078125, %v3093_v30  ;;  %v3098_v9 = vmul.f32 %v3096_v5, %v3096_v5 }
0x102e   : > { %v3097_v10 = vsub.f32 %v3089_v2, %v3095_v6  ;;  %3100 = vadd.xlane.f32.xlu1 %v3098_v9 }
0x1030   : > { %v3099_v11 = vmul.f32 %v3097_v10, %v3097_v10 }
0x1032   : > { %3102 = vadd.xlane.f32.xlu0 %v3099_v11 }
0x10b7   : > { %v3101_v12 = vpop.xlane.xlu1 %3100 }
0x10b8   : > { %v3104_v13 = vmul.f32 0.0078125, %v3101_v12 }
0x10ba   : > { %v3106_v14 = vadd.f32 1e-05, %v3104_v13 }
0x10bb   : > { %v3103_v55 = vpop.xlane.xlu0 %3102 }
0x10bc   : > { %4152 = vrsqrt.f32 %v3106_v14  ;;  %v3105_v56 = vmul.f32 0.0078125, %v3103_v55 }
0x10be   : > { %v3107_v15 = vadd.f32 1e-05, %v3105_v56 }
0x10c0   : > { %4154 = vrsqrt.f32 %v3107_v15 }
0x10c9   : > { %v4153_v16 = vpop.eup %4152 }
0x10ca   : > { %v3110_v18 = vmul.f32 %v4153_v16, %v3096_v5 }
0x10cc   : > { %v3119_v20 = vmul.f32 %v3440_v17, %v3110_v18 }
0x10cd   : > { %v4155_v21 = vpop.eup %4154 }
0x10ce   : > { %v3128_v1 = vadd.f32 %v3441_v19, %v3119_v20  ;;  %v3111_v23 = vmul.f32 %v4155_v21, %v3097_v10 }
0x10d0   : > { %v3120_v25 = vmul.f32 %v3440_v17, %v3111_v23  ;;  %3130 = vst [vmem:[%s772_s26] sm:$0xff] %v3128_v1 }
0x10d2   : > { %v3129_v22 = vadd.f32 %v3441_v19, %v3120_v25 }
0x10d4   : > { %3131 = vst [vmem:[%s772_s26 + $0x8] sm:$0xff] %v3129_v22 }
0x10d5   : > { %4381 = shalt.err (!%p4378_p7)
}
0x10d6   : > { %s4382_s23 = scalar_lea.hbm %s5163_s28, 256  ;;  %s4386_s19 = scalar_lea.hbm %s5307_s30, 512 }
0x10d7   : > { %p4383_p6 = scmp.ne.s32.totalorder %s5163_s28, %s4382_s23  ;;  %p4387_p10 = scmp.lt.s32.totalorder %s5163_s28, %s5307_s30 }
0x10d8   : > { %p4388_p11 = scmp.lt.s32.totalorder %s4386_s19, %s4382_s23 }
0x10d9   : > { %p4384_p0 = pnand %p4383_p6, %p5308_p9 }
0x10da   : > { %p4389_p13 = por %p4388_p11, %p4387_p10 }
0x10db   : > { %p4385_p8 = pneg %p4384_p0 }
0x10dd   : > { %p4390_p5 = pnand %p4389_p13, %p4385_p8 }
0x10df   : > { %4393 = shalt.err (!%p4390_p5)
}
0x10e0   : > { %s4476_s25 = smov 128   ;;  %s4477_s2 = smov 256  }
0x10e1   : > { %s4478_s10 = smov 8  }
0x10e2   : > { %3740 = dma.vmem_to_hbm [thread:$0]  (%p5308_p9), %s5165_s27, 256, %s5163_s28, %s3133_s18, %s4476_s25, %s4477_s2, %s4478_s10  }
0x10e3 PF: > { %s5309_s26 = sld [smem:[#allocation24_spill]]  ;;  %p5312_p4 = scmp.ge.s32.totalorder %s4452_s24, 2 }
0x10e4   : > { %s5310_s1 = sld [smem:[#allocation29_spill]] }
0x10e9   : > { %s3160_s13 = sand.u32 1, %s5309_s26  }
0x10ea   : > { %p5311_p1 = scmp.ne.s32.totalorder %s5310_s1, 0  ;;  %s3161_s3 = scalar_lea.sflag [#allocation4], %s3160_s13 }
0x10ec   : > { %p3769_p12 = pnand %p5312_p4, %p5311_p1 }
0x10ee   : > { %p3770_p2 = pneg %p3769_p12 }
0x10f0   : > { %4435 = dma.done.wait (%p3770_p2), %s3161_s3, 256  }
0x10f1   : > { %4437 = vsyncadd (%p3770_p2), %s3161_s3, 4294967040  ;;  %s5313_s24 = sld [smem:[#allocation26_spill]]  ;;  %s5316_s1 = smov %s4444_s22 }
0x10f2   : > { %s5314_s17 = sld [smem:[#allocation25_spill]] }
0x10f3   : > { %s5315_s23 = sld [smem:[#allocation27_spill]] }
0x10f7   : > { %p39_p3 = scmp.ge.s32.totalorder %s5313_s24, 4  }
0x10f8   : > { %s5317_s22 = smov %s5314_s17 }
0x10f9   :  { %41 = sbr.rel (!%p39_p3) target bundleno = 26 (0x1a), region = 182 }
0x10fe   :  { %3166 = vsyncpa [#allocation3], 1 }
0x10ff   :  { %3168 = vsyncpa [#allocation3 + $0x1], 1 }
0x1100   :  { %3169 = vsyncpa [#allocation6], 1 }
0x1101   :  { %3171 = vsyncpa [#allocation6 + $0x1], 1 }
0x1102   :  { %3172 = vsyncpa [#allocation9], 1 }
0x1103   :  { %3173 = vsyncpa [#allocation12], 1 }
0x1104   :  { %3174 = vsyncpa [#allocation15], 1 }
0x1105   :  { %3175 = vsyncpa [#allocation4], 1 }
0x1106   :  { %3177 = vsyncpa [#allocation4 + $0x1], 1 }

</bundles_post_ra>
